<compile_context>
chip_gen: v6e
topology: v6e:2x2x1
jax: 0.10.0
libtpu: 0.0.40
codegen_flags: <defaults>
</compile_context>

<pallas_src>
import jax
import jax.numpy as jnp
from jax.experimental import pallas as pl
from jax.experimental.pallas import tpu as pltpu


def _round_up(x, m):
    return ((x + m - 1) // m) * m


def _choose_tk(kp, cap=640):
    """Largest multiple of 128 that divides kp and is <= cap."""
    best, t = 128, 128
    while t <= min(kp, cap):
        if kp % t == 0:
            best = t
        t += 128
    return best


# ----------------------------------------------------------------------------
# Kernel 1 (convs): Y = relu(X @ W + b), single K block, M tiled + parallel.
# ----------------------------------------------------------------------------
def _mm_bias_relu_kernel(x_ref, w_ref, b_ref, o_ref):
    acc = jnp.dot(x_ref[...], w_ref[...], preferred_element_type=jnp.float32)
    acc = jnp.maximum(acc + b_ref[...], 0.0)
    o_ref[...] = acc.astype(o_ref.dtype)


def matmul_bias_relu(x_bf16, w_bf16, b_f32, *, tm_cap=256,
                     out_dtype=jnp.bfloat16):
    """x: (M, Kp) bf16 (K already padded to a multiple of 128),
       w: (Kp, Np) bf16, b: (1, Np) f32  ->  (Mp, Np) out_dtype."""
    M, Kp = x_bf16.shape
    Kp2, Np = w_bf16.shape
    assert Kp == Kp2 and Kp % 128 == 0 and Np % 128 == 0
    assert Kp <= 1024  # single K block for the conv layers of this net

    tm = min(tm_cap, _round_up(M, 16))
    Mp = _round_up(M, tm)
    xp = jnp.pad(x_bf16, ((0, Mp - M), (0, 0)))

    return pl.pallas_call(
        _mm_bias_relu_kernel,
        out_shape=jax.ShapeDtypeStruct((Mp, Np), out_dtype),
        grid_spec=pltpu.PrefetchScalarGridSpec(
            num_scalar_prefetch=0,
            grid=(Mp // tm,),
            in_specs=[
                pl.BlockSpec((tm, Kp), lambda i: (i, 0)),
                pl.BlockSpec((Kp, Np), lambda i: (0, 0)),   # weight resident
                pl.BlockSpec((1, Np), lambda i: (0, 0)),
            ],
            out_specs=pl.BlockSpec((tm, Np), lambda i: (i, 0)),
        ),
        compiler_params=pltpu.CompilerParams(
            dimension_semantics=("parallel",)),
    )(xp, w_bf16, b_f32)


# ----------------------------------------------------------------------------
# Kernel 2 (fused head): out = relu(X @ W1 + b1) @ W2 + b2.
# fc1 reduction is the K grid axis; the 512-wide hidden stays in VMEM.
# ----------------------------------------------------------------------------
def _fc_fused_kernel(x_ref, w1_ref, b1_ref, w2_ref, b2_ref, o_ref, h_acc):
    k = pl.program_id(1)

    @pl.when(k == 0)
    def _():
        h_acc[...] = jnp.zeros_like(h_acc)

    h_acc[...] += jnp.dot(x_ref[...], w1_ref[...],
                          preferred_element_type=jnp.float32)

    @pl.when(k == pl.num_programs(1) - 1)
    def _():
        h = jnp.maximum(h_acc[...] + b1_ref[...], 0.0).astype(jnp.bfloat16)
        y = jnp.dot(h, w2_ref[...], preferred_element_type=jnp.float32)
        o_ref[...] = (y + b2_ref[...]).astype(o_ref.dtype)


def fc_head(x_bf16, w1, b1, w2, b2, *, tm_cap=256, tk_cap=640):
    M, Kp = x_bf16.shape
    Kp2, H = w1.shape
    H2, N2p = w2.shape
    assert Kp == Kp2 and H == H2 and Kp % 128 == 0 and N2p % 128 == 0

    tm = min(tm_cap, _round_up(M, 16))
    Mp = _round_up(M, tm)
    xp = jnp.pad(x_bf16, ((0, Mp - M), (0, 0)))
    tk = _choose_tk(Kp, tk_cap)

    return pl.pallas_call(
        _fc_fused_kernel,
        out_shape=jax.ShapeDtypeStruct((Mp, N2p), jnp.float32),
        grid_spec=pltpu.PrefetchScalarGridSpec(
            num_scalar_prefetch=0,
            grid=(Mp // tm, Kp // tk),
            in_specs=[
                pl.BlockSpec((tm, tk), lambda i, k: (i, k)),
                pl.BlockSpec((tk, H), lambda i, k: (k, 0)),
                pl.BlockSpec((1, H), lambda i, k: (0, 0)),
                pl.BlockSpec((H, N2p), lambda i, k: (0, 0)),
                pl.BlockSpec((1, N2p), lambda i, k: (0, 0)),
            ],
            out_specs=pl.BlockSpec((tm, N2p), lambda i, k: (i, 0)),
            scratch_shapes=[pltpu.VMEM((tm, H), jnp.float32)],
        ),
        compiler_params=pltpu.CompilerParams(
            dimension_semantics=("parallel", "arbitrary")),
    )(xp, w1, b1, w2, b2)


# ----------------------------------------------------------------------------
# Conv2d (valid, square kernel, stride S) via im2col (bf16) + Pallas matmul.
# NHWC in, NHWC (bf16) out.
# ----------------------------------------------------------------------------
def _im2col_nhwc(x, K, S, Kp):
    """(B,H,W,C) -> ((B*Ho*Wo, Kp) bf16 patches with (ki,kj,c) ordering, Ho, Wo)."""
    B, H, W, C = x.shape
    Ho = (H - K) // S + 1
    Wo = (W - K) // S + 1
    patches = []
    for ki in range(K):
        for kj in range(K):
            patches.append(x[:, ki:ki + S * Ho:S, kj:kj + S * Wo:S, :])
    p = jnp.stack(patches, axis=3)                     # (B, Ho, Wo, K*K, C)
    p = p.reshape(B * Ho * Wo, K * K * C)
    if Kp > K * K * C:
        p = jnp.pad(p, ((0, 0), (0, Kp - K * K * C)))
    return p, Ho, Wo


def conv2d_relu_nhwc(x_nhwc, layer):
    B = x_nhwc.shape[0]
    patches, Ho, Wo = _im2col_nhwc(x_nhwc.astype(jnp.bfloat16),
                                   layer["ksize"], layer["stride"], layer["kp"])
    y = matmul_bias_relu(patches, layer["w"], layer["b"])
    y = y[:B * Ho * Wo, :layer["cout"]]
    return y.reshape(B, Ho, Wo, layer["cout"])


# ----------------------------------------------------------------------------
# Parameters: deterministic PyTorch-layout init + one-time kernel-ready prep.
# ----------------------------------------------------------------------------
def init_params(key, output_dim):
    ks = jax.random.split(key, 10)

    def w_init(k, shape, fan_in):
        return (jax.random.normal(k, shape, jnp.float32)
                * (1.0 / jnp.sqrt(fan_in))).astype(jnp.float32)

    return {
        "conv1_w": w_init(ks[0], (32, 4, 8, 8), 4 * 8 * 8),
        "conv1_b": w_init(ks[1], (32,), 4 * 8 * 8),
        "conv2_w": w_init(ks[2], (64, 32, 4, 4), 32 * 4 * 4),
        "conv2_b": w_init(ks[3], (64,), 32 * 4 * 4),
        "conv3_w": w_init(ks[4], (64, 64, 3, 3), 64 * 3 * 3),
        "conv3_b": w_init(ks[5], (64,), 64 * 3 * 3),
        "fc1_w": w_init(ks[6], (512, 3136), 3136),   # PyTorch Linear: (out, in)
        "fc1_b": w_init(ks[7], (512,), 3136),
        "fc2_w": w_init(ks[8], (output_dim, 512), 512),
        "fc2_b": w_init(ks[9], (output_dim,), 512),
    }


def prepare_params(params):
    """One-time: transpose/pad/cast weights to kernel-ready form (no per-step
    weight prep).

      * conv1 has stack_grayscale folded in: since the net always sees the
        single grayscale channel replicated 4x, conv1(w, repeat(x,4)) ==
        conv1(sum_cin w, x).  This shrinks conv1's K from 256 to 64.
      * fc1 gets the NCHW-flatten permutation baked in so conv activations can
        stay NHWC end-to-end.
    """
    def conv_layer(w, b, stride, fold_cin=False):
        cout, cin, k, _ = w.shape
        wm = jnp.transpose(w, (2, 3, 1, 0))                   # (k,k,cin,cout)
        if fold_cin:
            wm = jnp.sum(wm, axis=2, keepdims=True)           # grayscale fold
            cin = 1
        kk = k * k * cin
        kp = _round_up(kk, 128)
        np_ = _round_up(cout, 128)
        wm = wm.reshape(kk, cout)                             # row = (ki,kj,c)
        wm = jnp.pad(wm, ((0, kp - kk), (0, np_ - cout)))
        bm = jnp.pad(b, ((0, np_ - cout),)).reshape(1, np_)
        return {"w": wm.astype(jnp.bfloat16), "b": bm.astype(jnp.float32),
                "ksize": k, "stride": stride, "cout": cout, "kp": kp}

    prep = {
        "conv1": conv_layer(params["conv1_w"], params["conv1_b"], 4,
                            fold_cin=True),
        "conv2": conv_layer(params["conv2_w"], params["conv2_b"], 2),
        "conv3": conv_layer(params["conv3_w"], params["conv3_b"], 1),
    }

    # fc1: PyTorch flatten order is (c, h, w); our activation flattens (h, w, c).
    w1 = params["fc1_w"]                                      # (512, 3136)
    out1, k1 = w1.shape
    c, h, wdim = 64, 7, 7
    w1 = w1.reshape(out1, c, h, wdim)
    w1 = jnp.transpose(w1, (2, 3, 1, 0)).reshape(k1, out1)    # row = h*448+w*64+c
    k1p = _round_up(k1, 128)
    w1 = jnp.pad(w1, ((0, k1p - k1), (0, 0)))
    b1 = params["fc1_b"].reshape(1, out1)

    w2 = params["fc2_w"]                                      # (out_dim, 512)
    n2 = w2.shape[0]
    n2p = _round_up(n2, 128)
    w2 = jnp.pad(w2.T, ((0, 0), (0, n2p - n2)))
    b2 = jnp.pad(params["fc2_b"], ((0, n2p - n2),)).reshape(1, n2p)

    prep["fc"] = {"w1": w1.astype(jnp.bfloat16), "b1": b1.astype(jnp.float32),
                  "w2": w2.astype(jnp.bfloat16), "b2": b2.astype(jnp.float32),
                  "k1": k1, "k1p": k1p, "n2": n2}
    return prep


# ----------------------------------------------------------------------------
# Forward.
# ----------------------------------------------------------------------------
def marionet_forward(prep, x):
    """x: (B, 1, 84, 84) grayscale or (B, 3, 84, 84) RGB f32 -> (B, out_dim) f32."""
    if x.ndim == 5:
        x = jnp.squeeze(x, axis=1)
    if x.ndim == 3:
        x = x[None]
    B, C = x.shape[0], x.shape[1]

    # T.Grayscale(): ITU-R 601-2 luma for RGB; identity for single-channel.
    if C == 3:
        lw = jnp.array([0.2989, 0.587, 0.114], x.dtype).reshape(1, 3, 1, 1)
        x = jnp.sum(x * lw, axis=1, keepdims=True)
    # TODO(synk): torchvision Resize((84,84), antialias=True) has no clean
    # Pallas equivalent; inputs here must already be 84x84, for which the
    # transform is identity.

    # NCHW -> NHWC once.  stack_grayscale's 4-way channel replication is
    # folded into conv1's weight in prepare_params, so we keep 1 channel here.
    x = jnp.transpose(x, (0, 2, 3, 1)).astype(jnp.bfloat16)   # (B, 84, 84, 1)

    x = conv2d_relu_nhwc(x, prep["conv1"])   # (B, 20, 20, 32) bf16
    x = conv2d_relu_nhwc(x, prep["conv2"])   # (B,  9,  9, 64) bf16
    x = conv2d_relu_nhwc(x, prep["conv3"])   # (B,  7,  7, 64) bf16

    fc = prep["fc"]
    flat = x.reshape(B, -1)                                   # NHWC flatten order
    flat = jnp.pad(flat, ((0, 0), (0, fc["k1p"] - fc["k1"])))
    out = fc_head(flat, fc["w1"], fc["b1"], fc["w2"], fc["b2"])
    return out[:B, :fc["n2"]].astype(jnp.float32)


if __name__ == "__main__":
    output_dim = 8
    key = jax.random.PRNGKey(0)
    k_params, k_input = jax.random.split(key)

    params = init_params(k_params, output_dim)
    prep = prepare_params(params)

    # Small batch of grayscale frames; spatial must be 84x84 (Linear expects 3136).
    x = jax.random.uniform(k_input, (2, 1, 84, 84), jnp.float32)

    fwd = jax.jit(lambda inp: marionet_forward(prep, inp))
    out = jax.block_until_ready(fwd(x))

    assert out.shape == (2, output_dim), out.shape
    assert out.dtype == jnp.float32
    assert bool(jnp.all(jnp.isfinite(out)))
    print("KERNEL_OK")
</pallas_src>

<mosaic_0001>
module attributes {stable_mosaic.version = 11 : i64} {
  func.func @_mm_bias_relu_kernel(%arg0: i32, %arg1: memref<256x128xbf16, #tpu.memory_space<vmem>>, %arg2: memref<128x128xbf16, #tpu.memory_space<vmem>>, %arg3: memref<1x128xf32, #tpu.memory_space<vmem>>, %arg4: memref<256x128xbf16, #tpu.memory_space<vmem>>) attributes {dimension_semantics = [#tpu.dimension_semantics<parallel>], iteration_bounds = array<i64: 4>, scalar_prefetch = 0 : i64, scratch_operands = 0 : i64, tpu.core_type = #tpu.core_type<tc>, window_params = [{transform_indices = @transform_0, window_bounds = array<i64: 256, 128>}, {pipeline_mode = #tpu.pipeline_mode<synchronous>, transform_indices = @transform_1, window_bounds = array<i64: 128, 128>}, {pipeline_mode = #tpu.pipeline_mode<synchronous>, transform_indices = @transform_2, window_bounds = array<i64: 1, 128>}, {transform_indices = @transform_3, window_bounds = array<i64: 256, 128>}]} {
    %c0 = arith.constant 0 : index
    %c0_0 = arith.constant 0 : index
    %0 = vector.load %arg1[%c0, %c0_0] : memref<256x128xbf16, #tpu.memory_space<vmem>>, vector<256x128xbf16>
    %c0_1 = arith.constant 0 : index
    %c0_2 = arith.constant 0 : index
    %1 = vector.load %arg2[%c0_1, %c0_2] : memref<128x128xbf16, #tpu.memory_space<vmem>>, vector<128x128xbf16>
    %cst = arith.constant dense<0.000000e+00> : vector<256x128xf32>
    %2 = tpu.matmul %0, %1, %cst {dimension_numbers = #tpu.dot_dimension_numbers<[1], [0], [0], [1], [0, 0, 1, 1], [], []>} : vector<256x128xbf16>, vector<128x128xbf16>, vector<256x128xf32> -> vector<256x128xf32>
    %c0_3 = arith.constant 0 : index
    %c0_4 = arith.constant 0 : index
    %3 = vector.load %arg3[%c0_3, %c0_4] : memref<1x128xf32, #tpu.memory_space<vmem>>, vector<1x128xf32>
    %4 = vector.broadcast %3 : vector<1x128xf32> to vector<256x128xf32>
    %5 = arith.addf %2, %4 : vector<256x128xf32>
    %cst_5 = arith.constant 0.000000e+00 : f32
    %6 = vector.broadcast %cst_5 : f32 to vector<256x128xf32>
    %7 = arith.maximumf %5, %6 : vector<256x128xf32>
    %8 = arith.truncf %7 : vector<256x128xf32> to vector<256x128xbf16>
    %c0_6 = arith.constant 0 : index
    %c0_7 = arith.constant 0 : index
    %9 = vector.load %arg4[%c0_6, %c0_7] : memref<256x128xbf16, #tpu.memory_space<vmem>>, vector<256x128xbf16>
    tpu.vector_store %arg4[%c0_6, %c0_7], %8 {strides = array<i32>} : memref<256x128xbf16, #tpu.memory_space<vmem>>, vector<256x128xbf16>,
    return
  }
  func.func @transform_0(%arg0: i32) -> (i32, i32) {
    %c0_i32 = arith.constant 0 : i32
    %c0_i32_0 = arith.constant 0 : i32
    return %arg0, %c0_i32 : i32, i32
  }
  func.func @transform_1(%arg0: i32) -> (i32, i32) {
    %c0_i32 = arith.constant 0 : i32
    %c0_i32_0 = arith.constant 0 : i32
    %c0_i32_1 = arith.constant 0 : i32
    return %c0_i32, %c0_i32_0 : i32, i32
  }
  func.func @transform_2(%arg0: i32) -> (i32, i32) {
    %c0_i32 = arith.constant 0 : i32
    %c0_i32_0 = arith.constant 0 : i32
    %c0_i32_1 = arith.constant 0 : i32
    return %c0_i32, %c0_i32_0 : i32, i32
  }
  func.func @transform_3(%arg0: i32) -> (i32, i32) {
    %c0_i32 = arith.constant 0 : i32
    %c0_i32_0 = arith.constant 0 : i32
    return %arg0, %c0_i32 : i32, i32
  }
}

module attributes {stable_mosaic.version = 11 : i64} {
  func.func @_mm_bias_relu_kernel(%arg0: i32, %arg1: memref<176x512xbf16, #tpu.memory_space<vmem>>, %arg2: memref<512x128xbf16, #tpu.memory_space<vmem>>, %arg3: memref<1x128xf32, #tpu.memory_space<vmem>>, %arg4: memref<176x128xbf16, #tpu.memory_space<vmem>>) attributes {dimension_semantics = [#tpu.dimension_semantics<parallel>], iteration_bounds = array<i64: 1>, scalar_prefetch = 0 : i64, scratch_operands = 0 : i64, tpu.core_type = #tpu.core_type<tc>, window_params = [{transform_indices = @transform_0, window_bounds = array<i64: 176, 512>}, {pipeline_mode = #tpu.pipeline_mode<synchronous>, transform_indices = @transform_1, window_bounds = array<i64: 512, 128>}, {pipeline_mode = #tpu.pipeline_mode<synchronous>, transform_indices = @transform_2, window_bounds = array<i64: 1, 128>}, {transform_indices = @transform_3, window_bounds = array<i64: 176, 128>}]} {
    %c0 = arith.constant 0 : index
    %c0_0 = arith.constant 0 : index
    %0 = vector.load %arg1[%c0, %c0_0] : memref<176x512xbf16, #tpu.memory_space<vmem>>, vector<176x512xbf16>
    %c0_1 = arith.constant 0 : index
    %c0_2 = arith.constant 0 : index
    %1 = vector.load %arg2[%c0_1, %c0_2] : memref<512x128xbf16, #tpu.memory_space<vmem>>, vector<512x128xbf16>
    %cst = arith.constant dense<0.000000e+00> : vector<176x128xf32>
    %2 = tpu.matmul %0, %1, %cst {dimension_numbers = #tpu.dot_dimension_numbers<[1], [0], [0], [1], [0, 0, 1, 1], [], []>} : vector<176x512xbf16>, vector<512x128xbf16>, vector<176x128xf32> -> vector<176x128xf32>
    %c0_3 = arith.constant 0 : index
    %c0_4 = arith.constant 0 : index
    %3 = vector.load %arg3[%c0_3, %c0_4] : memref<1x128xf32, #tpu.memory_space<vmem>>, vector<1x128xf32>
    %4 = vector.broadcast %3 : vector<1x128xf32> to vector<176x128xf32>
    %5 = arith.addf %2, %4 : vector<176x128xf32>
    %cst_5 = arith.constant 0.000000e+00 : f32
    %6 = vector.broadcast %cst_5 : f32 to vector<176x128xf32>
    %7 = arith.maximumf %5, %6 : vector<176x128xf32>
    %8 = arith.truncf %7 : vector<176x128xf32> to vector<176x128xbf16>
    %c0_6 = arith.constant 0 : index
    %c0_7 = arith.constant 0 : index
    %9 = vector.load %arg4[%c0_6, %c0_7] : memref<176x128xbf16, #tpu.memory_space<vmem>>, vector<176x128xbf16>
    tpu.vector_store %arg4[%c0_6, %c0_7], %8 {strides = array<i32>} : memref<176x128xbf16, #tpu.memory_space<vmem>>, vector<176x128xbf16>,
    return
  }
  func.func @transform_0(%arg0: i32) -> (i32, i32) {
    %c0_i32 = arith.constant 0 : i32
    %c0_i32_0 = arith.constant 0 : i32
    return %arg0, %c0_i32 : i32, i32
  }
  func.func @transform_1(%arg0: i32) -> (i32, i32) {
    %c0_i32 = arith.constant 0 : i32
    %c0_i32_0 = arith.constant 0 : i32
    %c0_i32_1 = arith.constant 0 : i32
    return %c0_i32, %c0_i32_0 : i32, i32
  }
  func.func @transform_2(%arg0: i32) -> (i32, i32) {
    %c0_i32 = arith.constant 0 : i32
    %c0_i32_0 = arith.constant 0 : i32
    %c0_i32_1 = arith.constant 0 : i32
    return %c0_i32, %c0_i32_0 : i32, i32
  }
  func.func @transform_3(%arg0: i32) -> (i32, i32) {
    %c0_i32 = arith.constant 0 : i32
    %c0_i32_0 = arith.constant 0 : i32
    return %arg0, %c0_i32 : i32, i32
  }
}

module attributes {stable_mosaic.version = 11 : i64} {
  func.func @_mm_bias_relu_kernel(%arg0: i32, %arg1: memref<112x640xbf16, #tpu.memory_space<vmem>>, %arg2: memref<640x128xbf16, #tpu.memory_space<vmem>>, %arg3: memref<1x128xf32, #tpu.memory_space<vmem>>, %arg4: memref<112x128xbf16, #tpu.memory_space<vmem>>) attributes {dimension_semantics = [#tpu.dimension_semantics<parallel>], iteration_bounds = array<i64: 1>, scalar_prefetch = 0 : i64, scratch_operands = 0 : i64, tpu.core_type = #tpu.core_type<tc>, window_params = [{transform_indices = @transform_0, window_bounds = array<i64: 112, 640>}, {pipeline_mode = #tpu.pipeline_mode<synchronous>, transform_indices = @transform_1, window_bounds = array<i64: 640, 128>}, {pipeline_mode = #tpu.pipeline_mode<synchronous>, transform_indices = @transform_2, window_bounds = array<i64: 1, 128>}, {transform_indices = @transform_3, window_bounds = array<i64: 112, 128>}]} {
    %c0 = arith.constant 0 : index
    %c0_0 = arith.constant 0 : index
    %0 = vector.load %arg1[%c0, %c0_0] : memref<112x640xbf16, #tpu.memory_space<vmem>>, vector<112x640xbf16>
    %c0_1 = arith.constant 0 : index
    %c0_2 = arith.constant 0 : index
    %1 = vector.load %arg2[%c0_1, %c0_2] : memref<640x128xbf16, #tpu.memory_space<vmem>>, vector<640x128xbf16>
    %cst = arith.constant dense<0.000000e+00> : vector<112x128xf32>
    %2 = tpu.matmul %0, %1, %cst {dimension_numbers = #tpu.dot_dimension_numbers<[1], [0], [0], [1], [0, 0, 1, 1], [], []>} : vector<112x640xbf16>, vector<640x128xbf16>, vector<112x128xf32> -> vector<112x128xf32>
    %c0_3 = arith.constant 0 : index
    %c0_4 = arith.constant 0 : index
    %3 = vector.load %arg3[%c0_3, %c0_4] : memref<1x128xf32, #tpu.memory_space<vmem>>, vector<1x128xf32>
    %4 = vector.broadcast %3 : vector<1x128xf32> to vector<112x128xf32>
    %5 = arith.addf %2, %4 : vector<112x128xf32>
    %cst_5 = arith.constant 0.000000e+00 : f32
    %6 = vector.broadcast %cst_5 : f32 to vector<112x128xf32>
    %7 = arith.maximumf %5, %6 : vector<112x128xf32>
    %8 = arith.truncf %7 : vector<112x128xf32> to vector<112x128xbf16>
    %c0_6 = arith.constant 0 : index
    %c0_7 = arith.constant 0 : index
    %9 = vector.load %arg4[%c0_6, %c0_7] : memref<112x128xbf16, #tpu.memory_space<vmem>>, vector<112x128xbf16>
    tpu.vector_store %arg4[%c0_6, %c0_7], %8 {strides = array<i32>} : memref<112x128xbf16, #tpu.memory_space<vmem>>, vector<112x128xbf16>,
    return
  }
  func.func @transform_0(%arg0: i32) -> (i32, i32) {
    %c0_i32 = arith.constant 0 : i32
    %c0_i32_0 = arith.constant 0 : i32
    return %arg0, %c0_i32 : i32, i32
  }
  func.func @transform_1(%arg0: i32) -> (i32, i32) {
    %c0_i32 = arith.constant 0 : i32
    %c0_i32_0 = arith.constant 0 : i32
    %c0_i32_1 = arith.constant 0 : i32
    return %c0_i32, %c0_i32_0 : i32, i32
  }
  func.func @transform_2(%arg0: i32) -> (i32, i32) {
    %c0_i32 = arith.constant 0 : i32
    %c0_i32_0 = arith.constant 0 : i32
    %c0_i32_1 = arith.constant 0 : i32
    return %c0_i32, %c0_i32_0 : i32, i32
  }
  func.func @transform_3(%arg0: i32) -> (i32, i32) {
    %c0_i32 = arith.constant 0 : i32
    %c0_i32_0 = arith.constant 0 : i32
    return %arg0, %c0_i32 : i32, i32
  }
}

module attributes {stable_mosaic.version = 11 : i64} {
  func.func @_fc_fused_kernel(%arg0: i32, %arg1: i32, %arg2: memref<16x640xbf16, #tpu.memory_space<vmem>>, %arg3: memref<640x512xbf16, #tpu.memory_space<vmem>>, %arg4: memref<1x512xf32, #tpu.memory_space<vmem>>, %arg5: memref<512x128xbf16, #tpu.memory_space<vmem>>, %arg6: memref<1x128xf32, #tpu.memory_space<vmem>>, %arg7: memref<16x128xf32, #tpu.memory_space<vmem>>, %arg8: memref<16x512xf32, #tpu.memory_space<vmem>>) attributes {dimension_semantics = [#tpu.dimension_semantics<parallel>, #tpu.dimension_semantics<arbitrary>], iteration_bounds = array<i64: 1, 5>, scalar_prefetch = 0 : i64, scratch_operands = 1 : i64, tpu.core_type = #tpu.core_type<tc>, window_params = [{transform_indices = @transform_0, window_bounds = array<i64: 16, 640>}, {transform_indices = @transform_1, window_bounds = array<i64: 640, 512>}, {pipeline_mode = #tpu.pipeline_mode<synchronous>, transform_indices = @transform_2, window_bounds = array<i64: 1, 512>}, {pipeline_mode = #tpu.pipeline_mode<synchronous>, transform_indices = @transform_3, window_bounds = array<i64: 512, 128>}, {pipeline_mode = #tpu.pipeline_mode<synchronous>, transform_indices = @transform_4, window_bounds = array<i64: 1, 128>}, {transform_indices = @transform_5, window_bounds = array<i64: 16, 128>}]} {
    %c0_i32 = arith.constant 0 : i32
    %0 = arith.cmpi eq, %arg1, %c0_i32 : i32
    %1 = arith.extui %0 : i1 to i32
    %c0_i32_0 = arith.constant 0 : i32
    %2 = arith.cmpi ne, %1, %c0_i32_0 : i32
    scf.if %2 {
      %cst_9 = arith.constant 0.000000e+00 : f32
      %12 = vector.broadcast %cst_9 : f32 to vector<16x512xf32>
      %c0_10 = arith.constant 0 : index
      %c0_11 = arith.constant 0 : index
      %13 = vector.load %arg8[%c0_10, %c0_11] : memref<16x512xf32, #tpu.memory_space<vmem>>, vector<16x512xf32>
      tpu.vector_store %arg8[%c0_10, %c0_11], %12 {strides = array<i32>} : memref<16x512xf32, #tpu.memory_space<vmem>>, vector<16x512xf32>,
    } else {
    }
    %c0 = arith.constant 0 : index
    %c0_1 = arith.constant 0 : index
    %3 = vector.load %arg8[%c0, %c0_1] : memref<16x512xf32, #tpu.memory_space<vmem>>, vector<16x512xf32>
    %c0_2 = arith.constant 0 : index
    %c0_3 = arith.constant 0 : index
    %4 = vector.load %arg2[%c0_2, %c0_3] : memref<16x640xbf16, #tpu.memory_space<vmem>>, vector<16x640xbf16>
    %c0_4 = arith.constant 0 : index
    %c0_5 = arith.constant 0 : index
    %5 = vector.load %arg3[%c0_4, %c0_5] : memref<640x512xbf16, #tpu.memory_space<vmem>>, vector<640x512xbf16>
    %cst = arith.constant dense<0.000000e+00> : vector<16x512xf32>
    %6 = tpu.matmul %4, %5, %cst {dimension_numbers = #tpu.dot_dimension_numbers<[1], [0], [0], [1], [0, 0, 1, 1], [], []>} : vector<16x640xbf16>, vector<640x512xbf16>, vector<16x512xf32> -> vector<16x512xf32>
    %7 = arith.addf %3, %6 : vector<16x512xf32>
    %c0_6 = arith.constant 0 : index
    %c0_7 = arith.constant 0 : index
    %8 = vector.load %arg8[%c0_6, %c0_7] : memref<16x512xf32, #tpu.memory_space<vmem>>, vector<16x512xf32>
    tpu.vector_store %arg8[%c0_6, %c0_7], %7 {strides = array<i32>} : memref<16x512xf32, #tpu.memory_space<vmem>>, vector<16x512xf32>,
    %c4_i32 = arith.constant 4 : i32
    %9 = arith.cmpi eq, %arg1, %c4_i32 : i32
    %10 = arith.extui %9 : i1 to i32
    %c0_i32_8 = arith.constant 0 : i32
    %11 = arith.cmpi ne, %10, %c0_i32_8 : i32
    scf.if %11 {
      %c0_9 = arith.constant 0 : index
      %c0_10 = arith.constant 0 : index
      %12 = vector.load %arg8[%c0_9, %c0_10] : memref<16x512xf32, #tpu.memory_space<vmem>>, vector<16x512xf32>
      %c0_11 = arith.constant 0 : index
      %c0_12 = arith.constant 0 : index
      %13 = vector.load %arg4[%c0_11, %c0_12] : memref<1x512xf32, #tpu.memory_space<vmem>>, vector<1x512xf32>
      %14 = vector.broadcast %13 : vector<1x512xf32> to vector<16x512xf32>
      %15 = arith.addf %12, %14 : vector<16x512xf32>
      %cst_13 = arith.constant 0.000000e+00 : f32
      %16 = vector.broadcast %cst_13 : f32 to vector<16x512xf32>
      %17 = arith.maximumf %15, %16 : vector<16x512xf32>
      %18 = arith.truncf %17 : vector<16x512xf32> to vector<16x512xbf16>
      %c0_14 = arith.constant 0 : index
      %c0_15 = arith.constant 0 : index
      %19 = vector.load %arg5[%c0_14, %c0_15] : memref<512x128xbf16, #tpu.memory_space<vmem>>, vector<512x128xbf16>
      %cst_16 = arith.constant dense<0.000000e+00> : vector<16x128xf32>
      %20 = tpu.matmul %18, %19, %cst_16 {dimension_numbers = #tpu.dot_dimension_numbers<[1], [0], [0], [1], [0, 0, 1, 1], [], []>} : vector<16x512xbf16>, vector<512x128xbf16>, vector<16x128xf32> -> vector<16x128xf32>
      %c0_17 = arith.constant 0 : index
      %c0_18 = arith.constant 0 : index
      %21 = vector.load %arg6[%c0_17, %c0_18] : memref<1x128xf32, #tpu.memory_space<vmem>>, vector<1x128xf32>
      %22 = vector.broadcast %21 : vector<1x128xf32> to vector<16x128xf32>
      %23 = arith.addf %20, %22 : vector<16x128xf32>
      %c0_19 = arith.constant 0 : index
      %c0_20 = arith.constant 0 : index
      %24 = vector.load %arg7[%c0_19, %c0_20] : memref<16x128xf32, #tpu.memory_space<vmem>>, vector<16x128xf32>
      tpu.vector_store %arg7[%c0_19, %c0_20], %23 {strides = array<i32>} : memref<16x128xf32, #tpu.memory_space<vmem>>, vector<16x128xf32>,
    } else {
    }
    return
  }
  func.func @transform_0(%arg0: i32, %arg1: i32) -> (i32, i32) {
    %c0_i32 = arith.constant 0 : i32
    return %arg0, %arg1 : i32, i32
  }
  func.func @transform_1(%arg0: i32, %arg1: i32) -> (i32, i32) {
    %c0_i32 = arith.constant 0 : i32
    %c0_i32_0 = arith.constant 0 : i32
    return %arg1, %c0_i32 : i32, i32
  }
  func.func @transform_2(%arg0: i32, %arg1: i32) -> (i32, i32) {
    %c0_i32 = arith.constant 0 : i32
    %c0_i32_0 = arith.constant 0 : i32
    %c0_i32_1 = arith.constant 0 : i32
    return %c0_i32, %c0_i32_0 : i32, i32
  }
  func.func @transform_3(%arg0: i32, %arg1: i32) -> (i32, i32) {
    %c0_i32 = arith.constant 0 : i32
    %c0_i32_0 = arith.constant 0 : i32
    %c0_i32_1 = arith.constant 0 : i32
    return %c0_i32, %c0_i32_0 : i32, i32
  }
  func.func @transform_4(%arg0: i32, %arg1: i32) -> (i32, i32) {
    %c0_i32 = arith.constant 0 : i32
    %c0_i32_0 = arith.constant 0 : i32
    %c0_i32_1 = arith.constant 0 : i32
    return %c0_i32, %c0_i32_0 : i32, i32
  }
  func.func @transform_5(%arg0: i32, %arg1: i32) -> (i32, i32) {
    %c0_i32 = arith.constant 0 : i32
    %c0_i32_0 = arith.constant 0 : i32
    return %arg0, %c0_i32 : i32, i32
  }
}

</mosaic_0001>

<bundles_post_ra>
// kernel: _lambda_.4
= control target key start
LH: loop header
LB: loop body
LE: loop exit
PB: predicated region body
PF: predicated region fallthrough
CT: control target
= control target key end

     0   :  { %s1126_s12 = smov 0   ;;  %s1247_s0 = inlined_call_operand.vmem [shape: bf16[1024,128], index: 0, kind: input, shape index: {}]   ;;  %s1248_s1 = inlined_call_operand.vmem [shape: bf16[128,128], index: 1, kind: input, shape index: {}]   ;;  %s1249_s2 = inlined_call_operand.vmem [shape: f32[1,128], index: 2, kind: input, shape index: {}]   ;;  %s1250_s3 = inlined_call_operand.vmem [shape: bf16[1024,128], index: 3, kind: output, shape index: {}]  }
   0x1 LB: > { %s783_s13 = sadd.s32 4294967295, %s1104_s12   ;;  %p787_p0 = scmp.ge.s32.totalorder %s1104_s12, 1  ;;  %s1104_s12 = sphi %s1126_s12, %s13_s12  }
   0x2   : > { %p138_p1 = scmp.lt.s32.totalorder %s1104_s12, 5 }
   0x4   : > { %p139_p2 = pnand %p787_p0, %p138_p1 }
   0x5   : > { %s788_s16 = sshll.u32 (!%p139_p2), %s783_s13, 5 }
   0x6   : > { %142 = sbr.rel (%p139_p2) target bundleno = 274 (0x112), region = 32  ;;  %p163_p3 = scmp.lt.s32.totalorder (!%p139_p2), %s788_s16, 127 }
   0xb   : > { %v1074_v0 = vld [vmem:[%s1248_s1 + $0x38] sm:$0xff]   ;;  %v1075_v1 = vld [vmem:[%s1248_s1 + $0x30] sm:$0xff]   ;;  %s1252_s16 = smov (!%p163_p3, %s788_s16), 127  ;;  %v1076_v2 = vld [vmem:[%s1248_s1 + $0x28] sm:$0xff]  }
   0xc   : > { %1002 = vmatprep.subr.bf16.mxu0 %v1074_v0  ;;  %1050 = vmatprep.subr.bf16.mxu1 %v1074_v0  ;;  %s789_s21 = sshll.u32 %s1252_s16, 2  ;;  %v1077_v3 = vld [vmem:[%s1248_s1 + $0x20] sm:$0xff]   ;;  %v1078_v6 = vld [vmem:[%s1248_s1 + $0x18] sm:$0xff]   ;;  %v1079_v7 = vld [vmem:[%s1248_s1 + $0x10] sm:$0xff]  }
   0xd   : > { %1003 = vmatpush3.bf16.msra.mxu0 %v1074_v0  ;;  %1058 = vmatpush3.bf16.msra.mxu1 %v1074_v0  ;;  %s1151_s24 = scalar_lea.vmem %s1247_s0, %s789_s21  ;;  %v1080_v8 = vld [vmem:[%s1248_s1 + $0x8] sm:$0xff]   ;;  %v1081_v9 = vld [vmem:[%s1248_s1] sm:$0xff]   ;;  %s1202_s13 = scalar_lea.vmem %s1250_s3, %s789_s21 }
   0xe   : > { %1004 = vmatprep.subr.bf16.mxu0 %v1075_v1  ;;  %1051 = vmatprep.subr.bf16.mxu1 %v1075_v1  ;;  %v1082_v4 = vld [vmem:[%s1151_s24] sm:$0xff]   ;;  %v1084_v10 = vld [vmem:[%s1151_s24 + $0x8] sm:$0xff]   ;;  %v1086_v12 = vld [vmem:[%s1151_s24 + $0x10] sm:$0xff]  }
   0xf   : > { %v1083_v5 = vld [vmem:[%s1151_s24 + $0x40] sm:$0xff]   ;;  %1018 = vmatprep.mubr.bf16.mxu0 %v1082_v4  ;;  %v1085_v11 = vld [vmem:[%s1151_s24 + $0x48] sm:$0xff]   ;;  %v1087_v13 = vld [vmem:[%s1151_s24 + $0x50] sm:$0xff]  }
  0x10   : > { %1034 = vmatprep.mubr.bf16.mxu1 %v1083_v5  ;;  %v1088_v14 = vld [vmem:[%s1151_s24 + $0x18] sm:$0xff]   ;;  %v1090_v16 = vld [vmem:[%s1151_s24 + $0x20] sm:$0xff]   ;;  %v1092_v18 = vld [vmem:[%s1151_s24 + $0x28] sm:$0xff]  }
  0x11   : > { %1005 = vmatpush3.bf16.msra.mxu0 %v1075_v1  ;;  %1059 = vmatpush3.bf16.msra.mxu1 %v1075_v1  ;;  %v1089_v15 = vld [vmem:[%s1151_s24 + $0x58] sm:$0xff]   ;;  %v1091_v17 = vld [vmem:[%s1151_s24 + $0x60] sm:$0xff]   ;;  %v1093_v19 = vld [vmem:[%s1151_s24 + $0x68] sm:$0xff]  }
  0x12   : > { %1006 = vmatprep.subr.bf16.mxu0 %v1076_v2  ;;  %1052 = vmatprep.subr.bf16.mxu1 %v1076_v2  ;;  %v1094_v20 = vld [vmem:[%s1151_s24 + $0x30] sm:$0xff]   ;;  %v1096_v22 = vld [vmem:[%s1151_s24 + $0x38] sm:$0xff]   ;;  %v1187_v24 = vld [vmem:[%s1249_s2] ss:$0 sm:$0xff] }
  0x13   : > { %v1095_v21 = vld [vmem:[%s1151_s24 + $0x70] sm:$0xff]   ;;  %v1097_v23 = vld [vmem:[%s1151_s24 + $0x78] sm:$0xff]  }
  0x15   : > { %1007 = vmatpush3.bf16.msra.mxu0 %v1076_v2  ;;  %1060 = vmatpush3.bf16.msra.mxu1 %v1076_v2 }
  0x16   : > { %1008 = vmatprep.subr.bf16.mxu0 %v1077_v3  ;;  %1053 = vmatprep.subr.bf16.mxu1 %v1077_v3 }
  0x19   : > { %1009 = vmatpush3.bf16.msra.mxu0 %v1077_v3  ;;  %1061 = vmatpush3.bf16.msra.mxu1 %v1077_v3 }
  0x1a   : > { %1010 = vmatprep.subr.bf16.mxu0 %v1078_v6  ;;  %1054 = vmatprep.subr.bf16.mxu1 %v1078_v6 }
  0x1d   : > { %1011 = vmatpush3.bf16.msra.mxu0 %v1078_v6  ;;  %1062 = vmatpush3.bf16.msra.mxu1 %v1078_v6 }
  0x1e   : > { %1012 = vmatprep.subr.bf16.mxu0 %v1079_v7  ;;  %1055 = vmatprep.subr.bf16.mxu1 %v1079_v7 }
  0x21   : > { %1013 = vmatpush3.bf16.msra.mxu0 %v1079_v7  ;;  %1063 = vmatpush3.bf16.msra.mxu1 %v1079_v7 }
  0x22   : > { %1014 = vmatprep.subr.bf16.mxu0 %v1080_v8  ;;  %1056 = vmatprep.subr.bf16.mxu1 %v1080_v8 }
  0x25   : > { %1015 = vmatpush3.bf16.msra.mxu0 %v1080_v8  ;;  %1064 = vmatpush3.bf16.msra.mxu1 %v1080_v8 }
  0x26   : > { %1016 = vmatprep.subr.bf16.mxu0 %v1081_v9  ;;  %1057 = vmatprep.subr.bf16.mxu1 %v1081_v9 }
  0x29   : > { %1017 = vmatpush3.bf16.msra.mxu0 %v1081_v9  ;;  %1065 = vmatpush3.bf16.msra.mxu1 %v1081_v9 }
  0x2c   : > { %1019 = vmatmul.mubr.bf16.vlgmr.msra.gmra.mxu0 %v1084_v10  ;;  %1035 = vmatmul.mubr.bf16.vlgmr.msra.gmra.mxu1 %v1085_v11 }
  0x2d   : > { %1022 = vmatprep.mubr.bf16.mxu0 %v1086_v12  ;;  %1038 = vmatprep.mubr.bf16.mxu1 %v1087_v13 }
  0x34   : > { %1023 = vmatmul.mubr.bf16.gmra.mxu0 %v1088_v14  ;;  %1039 = vmatmul.mubr.bf16.gmra.mxu1 %v1089_v15 }
  0x35   : > { %1026 = vmatprep.mubr.bf16.mxu0 %v1090_v16  ;;  %1042 = vmatprep.mubr.bf16.mxu1 %v1091_v17 }
  0x3c   : > { %1027 = vmatmul.mubr.bf16.gmra.mxu0 %v1092_v18  ;;  %1043 = vmatmul.mubr.bf16.gmra.mxu1 %v1093_v19 }
  0x3d   : > { %1030 = vmatprep.mubr.bf16.mxu0 %v1094_v20  ;;  %1046 = vmatprep.mubr.bf16.mxu1 %v1095_v21 }
  0x44   : > { %1031 = vmatmul.mubr.bf16.gmra.mxu0 %v1096_v22  ;;  %1047 = vmatmul.mubr.bf16.gmra.mxu1 %v1097_v23 }
  0xec   : > { %v1020_v25 = vpop.f32.mrf.mxu0  ;;  %v1036_v26 = vpop.f32.mrf.mxu1 }
  0xed   : > { %v417_v27 = vadd.f32 %v1020_v25, %v1187_v24  ;;  %v481_v28 = vadd.f32 %v1036_v26, %v1187_v24 }
  0xee   : > { %v408_v29 = vpop.f32.mrf.mxu0  ;;  %v472_v30 = vpop.f32.mrf.mxu1 }
  0xef   : > { %v409_v31 = vadd.f32 %v1187_v24, %v408_v29  ;;  %v473_v32 = vadd.f32 %v1187_v24, %v472_v30  ;;  %v537_v37 = vmax.f32 %v417_v27, 0.0  ;;  %v553_v38 = vmax.f32 %v481_v28, 0.0 }
  0xf0   : > { %v1021_v33 = vpop.f32.mrf.mxu0  ;;  %v1037_v34 = vpop.f32.mrf.mxu1 }
  0xf1   : > { %v420_v35 = vadd.f32 %v1021_v33, %v1187_v24  ;;  %v484_v36 = vadd.f32 %v1037_v34, %v1187_v24  ;;  %v535_v45 = vmax.f32 %v409_v31, 0.0  ;;  %v551_v46 = vmax.f32 %v473_v32, 0.0 }
  0xf2   : > { %v411_v39 = vpop.f32.mrf.mxu0  ;;  %v475_v40 = vpop.f32.mrf.mxu1 }
  0xf3   : > { %v538_v41 = vmax.f32 %v420_v35, 0.0  ;;  %v554_v42 = vmax.f32 %v484_v36, 0.0  ;;  %v412_v43 = vadd.f32 %v1187_v24, %v411_v39  ;;  %v476_v44 = vadd.f32 %v1187_v24, %v475_v40 }
  0xf4   : > { %v1024_v47 = vpop.f32.mrf.mxu0  ;;  %v1040_v48 = vpop.f32.mrf.mxu1 }
  0xf5   : > { %v891_v49 = vpack.c.bf16 %v538_v41, %v537_v37  ;;  %v931_v50 = vpack.c.bf16 %v554_v42, %v553_v38  ;;  %v536_v51 = vmax.f32 %v412_v43, 0.0  ;;  %v552_v52 = vmax.f32 %v476_v44, 0.0 }
  0xf6   : > { %v433_v53 = vadd.f32 %v1024_v47, %v1187_v24  ;;  %v497_v54 = vadd.f32 %v1040_v48, %v1187_v24  ;;  %v424_v55 = vpop.f32.mrf.mxu0  ;;  %v488_v56 = vpop.f32.mrf.mxu1 }
  0xf7   : > { %963 = vst [vmem:[%s1202_s13 + $0x8] sm:$0xff] %v891_v49   ;;  %971 = vst [vmem:[%s1202_s13 + $0x48] sm:$0xff] %v931_v50   ;;  %v886_v57 = vpack.c.bf16 %v536_v51, %v535_v45  ;;  %v926_v58 = vpack.c.bf16 %v552_v52, %v551_v46  ;;  %v425_v59 = vadd.f32 %v1187_v24, %v424_v55 }
  0xf8   : > { %v489_v60 = vadd.f32 %v1187_v24, %v488_v56  ;;  %v1025_v61 = vpop.f32.mrf.mxu0  ;;  %v1041_v62 = vpop.f32.mrf.mxu1  ;;  %v541_v1 = vmax.f32 %v433_v53, 0.0  ;;  %v557_v2 = vmax.f32 %v497_v54, 0.0 }
  0xf9   : > { %887 = vst [vmem:[%s1202_s13] sm:$0xff] %v886_v57   ;;  %970 = vst [vmem:[%s1202_s13 + $0x40] sm:$0xff] %v926_v58   ;;  %v436_v63 = vadd.f32 %v1025_v61, %v1187_v24  ;;  %v500_v0 = vadd.f32 %v1041_v62, %v1187_v24  ;;  %v539_v9 = vmax.f32 %v425_v59, 0.0 }
  0xfa   : > { %v427_v3 = vpop.f32.mrf.mxu0  ;;  %v491_v4 = vpop.f32.mrf.mxu1  ;;  %v555_v10 = vmax.f32 %v489_v60, 0.0 }
  0xfb   : > { %v542_v5 = vmax.f32 %v436_v63, 0.0  ;;  %v558_v6 = vmax.f32 %v500_v0, 0.0  ;;  %v428_v7 = vadd.f32 %v1187_v24, %v427_v3  ;;  %v492_v8 = vadd.f32 %v1187_v24, %v491_v4 }
  0xfc   : > { %v1028_v11 = vpop.f32.mrf.mxu0  ;;  %v1044_v12 = vpop.f32.mrf.mxu1 }
  0xfd   : > { %v901_v13 = vpack.c.bf16 %v542_v5, %v541_v1  ;;  %v941_v14 = vpack.c.bf16 %v558_v6, %v557_v2  ;;  %v540_v15 = vmax.f32 %v428_v7, 0.0  ;;  %v556_v16 = vmax.f32 %v492_v8, 0.0 }
  0xfe   : > { %v449_v17 = vadd.f32 %v1028_v11, %v1187_v24  ;;  %v513_v18 = vadd.f32 %v1044_v12, %v1187_v24  ;;  %v440_v19 = vpop.f32.mrf.mxu0  ;;  %v504_v20 = vpop.f32.mrf.mxu1 }
  0xff   : > { %965 = vst [vmem:[%s1202_s13 + $0x18] sm:$0xff] %v901_v13   ;;  %973 = vst [vmem:[%s1202_s13 + $0x58] sm:$0xff] %v941_v14   ;;  %v896_v21 = vpack.c.bf16 %v540_v15, %v539_v9  ;;  %v936_v22 = vpack.c.bf16 %v556_v16, %v555_v10  ;;  %v441_v23 = vadd.f32 %v1187_v24, %v440_v19 }
 0x100   : > { %v505_v25 = vadd.f32 %v1187_v24, %v504_v20  ;;  %v1029_v26 = vpop.f32.mrf.mxu0  ;;  %v1045_v27 = vpop.f32.mrf.mxu1  ;;  %v545_v30 = vmax.f32 %v449_v17, 0.0  ;;  %v561_v31 = vmax.f32 %v513_v18, 0.0 }
 0x101   : > { %964 = vst [vmem:[%s1202_s13 + $0x10] sm:$0xff] %v896_v21   ;;  %972 = vst [vmem:[%s1202_s13 + $0x50] sm:$0xff] %v936_v22   ;;  %v452_v28 = vadd.f32 %v1029_v26, %v1187_v24  ;;  %v516_v29 = vadd.f32 %v1045_v27, %v1187_v24  ;;  %v543_v38 = vmax.f32 %v441_v23, 0.0 }
 0x102   : > { %v443_v32 = vpop.f32.mrf.mxu0  ;;  %v507_v33 = vpop.f32.mrf.mxu1  ;;  %v559_v39 = vmax.f32 %v505_v25, 0.0 }
 0x103   : > { %v546_v34 = vmax.f32 %v452_v28, 0.0  ;;  %v562_v35 = vmax.f32 %v516_v29, 0.0  ;;  %v444_v36 = vadd.f32 %v1187_v24, %v443_v32  ;;  %v508_v37 = vadd.f32 %v1187_v24, %v507_v33 }
 0x104   : > { %v1032_v40 = vpop.f32.mrf.mxu0  ;;  %v1048_v41 = vpop.f32.mrf.mxu1 }
 0x105   : > { %v911_v42 = vpack.c.bf16 %v546_v34, %v545_v30  ;;  %v951_v43 = vpack.c.bf16 %v562_v35, %v561_v31  ;;  %v544_v44 = vmax.f32 %v444_v36, 0.0  ;;  %v560_v45 = vmax.f32 %v508_v37, 0.0 }
 0x106   : > { %v465_v46 = vadd.f32 %v1032_v40, %v1187_v24  ;;  %v529_v47 = vadd.f32 %v1048_v41, %v1187_v24  ;;  %v456_v48 = vpop.f32.mrf.mxu0  ;;  %v520_v49 = vpop.f32.mrf.mxu1 }
 0x107   : > { %967 = vst [vmem:[%s1202_s13 + $0x28] sm:$0xff] %v911_v42   ;;  %975 = vst [vmem:[%s1202_s13 + $0x68] sm:$0xff] %v951_v43   ;;  %v906_v50 = vpack.c.bf16 %v544_v44, %v543_v38  ;;  %v946_v51 = vpack.c.bf16 %v560_v45, %v559_v39  ;;  %v457_v52 = vadd.f32 %v1187_v24, %v456_v48 }
 0x108   : > { %v521_v53 = vadd.f32 %v1187_v24, %v520_v49  ;;  %v1033_v54 = vpop.f32.mrf.mxu0  ;;  %v1049_v55 = vpop.f32.mrf.mxu1  ;;  %v549_v58 = vmax.f32 %v465_v46, 0.0  ;;  %v565_v59 = vmax.f32 %v529_v47, 0.0 }
 0x109   : > { %966 = vst [vmem:[%s1202_s13 + $0x20] sm:$0xff] %v906_v50   ;;  %974 = vst [vmem:[%s1202_s13 + $0x60] sm:$0xff] %v946_v51   ;;  %v468_v56 = vadd.f32 %v1033_v54, %v1187_v24  ;;  %v532_v57 = vadd.f32 %v1049_v55, %v1187_v24  ;;  %v547_v2 = vmax.f32 %v457_v52, 0.0 }
 0x10a   : > { %v459_v60 = vpop.f32.mrf.mxu0  ;;  %v523_v61 = vpop.f32.mrf.mxu1  ;;  %v563_v3 = vmax.f32 %v521_v53, 0.0 }
 0x10b   : > { %v550_v62 = vmax.f32 %v468_v56, 0.0  ;;  %v566_v63 = vmax.f32 %v532_v57, 0.0  ;;  %v460_v0 = vadd.f32 %v1187_v24, %v459_v60  ;;  %v524_v1 = vadd.f32 %v1187_v24, %v523_v61 }
 0x10d   : > { %v921_v4 = vpack.c.bf16 %v550_v62, %v549_v58  ;;  %v961_v5 = vpack.c.bf16 %v566_v63, %v565_v59  ;;  %v548_v6 = vmax.f32 %v460_v0, 0.0  ;;  %v564_v7 = vmax.f32 %v524_v1, 0.0 }
 0x10f   : > { %969 = vst [vmem:[%s1202_s13 + $0x38] sm:$0xff] %v921_v4   ;;  %977 = vst [vmem:[%s1202_s13 + $0x78] sm:$0xff] %v961_v5   ;;  %v916_v8 = vpack.c.bf16 %v548_v6, %v547_v2  ;;  %v956_v9 = vpack.c.bf16 %v564_v7, %v563_v3 }
 0x111   : > { %968 = vst [vmem:[%s1202_s13 + $0x30] sm:$0xff] %v916_v8   ;;  %976 = vst [vmem:[%s1202_s13 + $0x70] sm:$0xff] %v956_v9  }
 0x112 PF: > { %s13_s12 = sadd.s32 1, %s1104_s12  }
 0x113   : > { %p10_p4 = scmp.ge.s32.totalorder %s13_s12, 6  }
 0x115   :  { %12 = sbr.rel (!%p10_p4) target bundleno = 1 (0x1), region = 62 }

// kernel: _lambda_.5
= control target key start
LH: loop header
LB: loop body
LE: loop exit
PB: predicated region body
PF: predicated region fallthrough
CT: control target
= control target key end

     0   :  { %s1676_s1 = inlined_call_operand.vmem [shape: bf16[512,128], index: 1, kind: input, shape index: {}]   ;;  %s1677_s0 = inlined_call_operand.vmem [shape: bf16[176,512], index: 0, kind: input, shape index: {}]   ;;  %s1678_s2 = inlined_call_operand.vmem [shape: f32[1,128], index: 2, kind: input, shape index: {}]   ;;  %s1679_s3 = inlined_call_operand.vmem [shape: bf16[176,128], index: 3, kind: output, shape index: {}]  }
   0x1   :  { %v1270_v0 = vld [vmem:[%s1676_s1 + $0x78] sm:$0xff]   ;;  %v1274_v4 = vld [vmem:[%s1676_s1 + $0x70] sm:$0xff]   ;;  %v1278_v8 = vld [vmem:[%s1676_s1 + $0x68] sm:$0xff]  }
   0x2   :  { %v1271_v1 = vld [vmem:[%s1676_s1 + $0xf8] sm:$0xff]   ;;  %1106 = vmatprep.subr.bf16.mxu0 %v1270_v0  ;;  %v1275_v5 = vld [vmem:[%s1676_s1 + $0xf0] sm:$0xff]   ;;  %v1279_v9 = vld [vmem:[%s1676_s1 + $0xe8] sm:$0xff]  }
   0x3   :  { %v1272_v2 = vld [vmem:[%s1676_s1 + $0x38] sm:$0xff]   ;;  %1188 = vmatprep.subr.bf16.mxu1 %v1271_v1  ;;  %v1276_v6 = vld [vmem:[%s1676_s1 + $0x30] sm:$0xff]   ;;  %v1280_v10 = vld [vmem:[%s1676_s1 + $0x28] sm:$0xff]  }
   0x4   :  { %v1273_v3 = vld [vmem:[%s1676_s1 + $0xb8] sm:$0xff]   ;;  %1107 = vmatpush3.bf16.msra.mxu0 %v1272_v2  ;;  %v1277_v7 = vld [vmem:[%s1676_s1 + $0xb0] sm:$0xff]   ;;  %v1281_v11 = vld [vmem:[%s1676_s1 + $0xa8] sm:$0xff]  }
   0x5   :  { %1189 = vmatpush3.bf16.msra.mxu1 %v1273_v3  ;;  %1108 = vmatprep.subr.bf16.mxu0 %v1274_v4  ;;  %v1282_v12 = vld [vmem:[%s1676_s1 + $0x60] sm:$0xff]   ;;  %v1286_v16 = vld [vmem:[%s1676_s1 + $0x58] sm:$0xff]   ;;  %v1290_v20 = vld [vmem:[%s1676_s1 + $0x50] sm:$0xff]  }
   0x6   :  { %1190 = vmatprep.subr.bf16.mxu1 %v1275_v5  ;;  %v1283_v13 = vld [vmem:[%s1676_s1 + $0xe0] sm:$0xff]   ;;  %v1287_v17 = vld [vmem:[%s1676_s1 + $0xd8] sm:$0xff]   ;;  %v1291_v21 = vld [vmem:[%s1676_s1 + $0xd0] sm:$0xff]  }
   0x7   :  { %v1284_v14 = vld [vmem:[%s1676_s1 + $0x20] sm:$0xff]   ;;  %v1288_v18 = vld [vmem:[%s1676_s1 + $0x18] sm:$0xff]   ;;  %v1292_v22 = vld [vmem:[%s1676_s1 + $0x10] sm:$0xff]  }
   0x8   :  { %1109 = vmatpush3.bf16.msra.mxu0 %v1276_v6  ;;  %v1285_v15 = vld [vmem:[%s1676_s1 + $0xa0] sm:$0xff]   ;;  %v1289_v19 = vld [vmem:[%s1676_s1 + $0x98] sm:$0xff]   ;;  %v1293_v23 = vld [vmem:[%s1676_s1 + $0x90] sm:$0xff]  }
   0x9   :  { %1191 = vmatpush3.bf16.msra.mxu1 %v1277_v7  ;;  %1110 = vmatprep.subr.bf16.mxu0 %v1278_v8  ;;  %v1294_v24 = vld [vmem:[%s1676_s1 + $0x48] sm:$0xff]   ;;  %v1298_v28 = vld [vmem:[%s1676_s1 + $0x40] sm:$0xff]  }
   0xa   :  { %1192 = vmatprep.subr.bf16.mxu1 %v1279_v9  ;;  %v1295_v25 = vld [vmem:[%s1676_s1 + $0xc8] sm:$0xff]   ;;  %v1299_v29 = vld [vmem:[%s1676_s1 + $0xc0] sm:$0xff]  }
   0xb   :  { %v1296_v26 = vld [vmem:[%s1676_s1 + $0x8] sm:$0xff]   ;;  %v1300_v30 = vld [vmem:[%s1676_s1] sm:$0xff]  }
   0xc   :  { %1111 = vmatpush3.bf16.msra.mxu0 %v1280_v10  ;;  %v1297_v27 = vld [vmem:[%s1676_s1 + $0x88] sm:$0xff]   ;;  %v1301_v31 = vld [vmem:[%s1676_s1 + $0x80] sm:$0xff]  }
   0xd   :  { %1193 = vmatpush3.bf16.msra.mxu1 %v1281_v11  ;;  %1112 = vmatprep.subr.bf16.mxu0 %v1282_v12  ;;  %v1302_v32 = vld [vmem:[%s1677_s0] ss:$16 sps:$4 sm:$0xff]   ;;  %v1304_v33 = vld [vmem:[%s1677_s0 + $0x4] ss:$16 sps:$4 sm:$0xff]   ;;  %v1305_v34 = vld [vmem:[%s1677_s0 + $0x8] ss:$16 sps:$4 sm:$0xff]  }
   0xe   :  { %1194 = vmatprep.subr.bf16.mxu1 %v1283_v13  ;;  %v1307_v35 = vld [vmem:[%s1677_s0 + $0xc] ss:$16 sps:$4 sm:$0xff]   ;;  %574 = vmatprep.mubr.bf16.mxu0 %v1304_v33  ;;  %v1308_v36 = vld [vmem:[%s1677_s0 + $0x24] ss:$16 sps:$4 sm:$0xff]   ;;  %v1312_v38 = vld [vmem:[%s1677_s0 + $0x20] ss:$16 sps:$4 sm:$0xff]  }
   0xf   :  { %695 = vmatprep.mubr.bf16.mxu1 %v1307_v35  ;;  %v1310_v37 = vld [vmem:[%s1677_s0 + $0x2c] ss:$16 sps:$4 sm:$0xff]   ;;  %v1313_v39 = vld [vmem:[%s1677_s0 + $0x28] ss:$16 sps:$4 sm:$0xff]   ;;  %v1314_v40 = vld [vmem:[%s1677_s0 + $0x44] ss:$16 sps:$4 sm:$0xff]  }
  0x10   :  { %1113 = vmatpush3.bf16.msra.mxu0 %v1284_v14  ;;  %v1316_v41 = vld [vmem:[%s1677_s0 + $0x4c] ss:$16 sps:$4 sm:$0xff]   ;;  %v1318_v42 = vld [vmem:[%s1677_s0 + $0x40] ss:$16 sps:$4 sm:$0xff]   ;;  %v1319_v43 = vld [vmem:[%s1677_s0 + $0x48] ss:$16 sps:$4 sm:$0xff]  }
  0x11   :  { %1195 = vmatpush3.bf16.msra.mxu1 %v1285_v15  ;;  %1114 = vmatprep.subr.bf16.mxu0 %v1286_v16  ;;  %v1320_v44 = vld [vmem:[%s1677_s0 + $0x64] ss:$16 sps:$4 sm:$0xff]   ;;  %v1322_v45 = vld [vmem:[%s1677_s0 + $0x6c] ss:$16 sps:$4 sm:$0xff]   ;;  %v1324_v46 = vld [vmem:[%s1677_s0 + $0x60] ss:$16 sps:$4 sm:$0xff]  }
  0x12   :  { %1196 = vmatprep.subr.bf16.mxu1 %v1287_v17  ;;  %v1325_v47 = vld [vmem:[%s1677_s0 + $0x68] ss:$16 sps:$4 sm:$0xff]   ;;  %v1326_v48 = vld [vmem:[%s1677_s0 + $0x84] ss:$16 sps:$4 sm:$0xff]   ;;  %v1328_v49 = vld [vmem:[%s1677_s0 + $0x8c] ss:$16 sps:$4 sm:$0xff]  }
  0x13   :  { %v1330_v50 = vld [vmem:[%s1677_s0 + $0x80] ss:$16 sps:$4 sm:$0xff]   ;;  %v1331_v51 = vld [vmem:[%s1677_s0 + $0x88] ss:$16 sps:$4 sm:$0xff]   ;;  %v1332_v52 = vld [vmem:[%s1677_s0 + $0xa4] ss:$16 sps:$4 sm:$0xff]  }
  0x14   :  { %1115 = vmatpush3.bf16.msra.mxu0 %v1288_v18  ;;  %v1334_v53 = vld [vmem:[%s1677_s0 + $0xac] ss:$16 sps:$4 sm:$0xff]   ;;  %v1336_v54 = vld [vmem:[%s1677_s0 + $0xa0] ss:$16 sps:$4 sm:$0xff]   ;;  %v1337_v55 = vld [vmem:[%s1677_s0 + $0xa8] ss:$16 sps:$4 sm:$0xff]  }
  0x15   :  { %1197 = vmatpush3.bf16.msra.mxu1 %v1289_v19  ;;  %1116 = vmatprep.subr.bf16.mxu0 %v1290_v20  ;;  %v1338_v56 = vld [vmem:[%s1677_s0 + $0xc4] ss:$16 sps:$4 sm:$0xff]   ;;  %v1340_v57 = vld [vmem:[%s1677_s0 + $0xcc] ss:$16 sps:$4 sm:$0xff]   ;;  %v1342_v58 = vld [vmem:[%s1677_s0 + $0xc0] ss:$16 sps:$4 sm:$0xff]  }
  0x16   :  { %1198 = vmatprep.subr.bf16.mxu1 %v1291_v21  ;;  %v1343_v59 = vld [vmem:[%s1677_s0 + $0xc8] ss:$16 sps:$4 sm:$0xff]   ;;  %v1344_v60 = vld [vmem:[%s1677_s0 + $0xe4] ss:$16 sps:$4 sm:$0xff]   ;;  %v1346_v61 = vld [vmem:[%s1677_s0 + $0xec] ss:$16 sps:$4 sm:$0xff]  }
  0x17   :  { %v1348_v62 = vld [vmem:[%s1677_s0 + $0xe0] ss:$16 sps:$4 sm:$0xff]   ;;  %v1349_v63 = vld [vmem:[%s1677_s0 + $0xe8] ss:$16 sps:$4 sm:$0xff]   ;;  %v1350_v0 = vld [vmem:[%s1677_s0 + $0x104] ss:$16 sps:$4 sm:$0xff]  }
  0x18   :  { %1117 = vmatpush3.bf16.msra.mxu0 %v1292_v22  ;;  %v1352_v1 = vld [vmem:[%s1677_s0 + $0x10c] ss:$16 sps:$4 sm:$0xff]   ;;  %v1354_v2 = vld [vmem:[%s1677_s0 + $0x100] ss:$16 sps:$4 sm:$0xff]   ;;  %v1355_v3 = vld [vmem:[%s1677_s0 + $0x108] ss:$16 sps:$4 sm:$0xff]  }
  0x19   :  { %1199 = vmatpush3.bf16.msra.mxu1 %v1293_v23  ;;  %1118 = vmatprep.subr.bf16.mxu0 %v1294_v24  ;;  %v1356_v4 = vld [vmem:[%s1677_s0 + $0x124] ss:$16 sps:$4 sm:$0xff]   ;;  %v1358_v5 = vld [vmem:[%s1677_s0 + $0x12c] ss:$16 sps:$4 sm:$0xff]   ;;  %v1360_v6 = vld [vmem:[%s1677_s0 + $0x120] ss:$16 sps:$4 sm:$0xff]  }
  0x1a   :  { %1200 = vmatprep.subr.bf16.mxu1 %v1295_v25  ;;  %v1361_v7 = vld [vmem:[%s1677_s0 + $0x128] ss:$16 sps:$4 sm:$0xff]   ;;  %v1362_v8 = vld [vmem:[%s1677_s0 + $0x144] ss:$16 sps:$4 sm:$0xff]   ;;  %v1364_v9 = vld [vmem:[%s1677_s0 + $0x14c] ss:$16 sps:$4 sm:$0xff]  }
  0x1b   :  { %v1366_v10 = vld [vmem:[%s1677_s0 + $0x140] ss:$16 sps:$4 sm:$0xff]   ;;  %v1367_v11 = vld [vmem:[%s1677_s0 + $0x148] ss:$16 sps:$4 sm:$0xff]  }
  0x1c   :  { %1119 = vmatpush3.bf16.msra.mxu0 %v1296_v26  ;;  %v1619_v14 = vld [vmem:[%s1678_s2] ss:$0 sm:$0xff] }
  0x1d   :  { %1201 = vmatpush3.bf16.msra.mxu1 %v1297_v27  ;;  %1120 = vmatprep.subr.bf16.mxu0 %v1298_v28 }
  0x1e   :  { %1202 = vmatprep.subr.bf16.mxu1 %v1299_v29 }
  0x20   :  { %1121 = vmatpush3.bf16.msra.mxu0 %v1300_v30 }
  0x21   :  { %1203 = vmatpush3.bf16.msra.mxu1 %v1301_v31 }
  0x23   :  { %575 = vmatmul.mubr.bf16.vlgmr.msra.gmra.mxu0 %v1302_v32 }
  0x24   :  { %696 = vmatmul.mubr.bf16.vlgmr.msra.gmra.mxu1 %v1305_v34  ;;  %582 = vmatprep.mubr.bf16.mxu0 %v1308_v36 }
  0x25   :  { %703 = vmatprep.mubr.bf16.mxu1 %v1310_v37 }
  0x2b   :  { %583 = vmatmul.mubr.bf16.gmra.mxu0 %v1312_v38 }
  0x2c   :  { %704 = vmatmul.mubr.bf16.gmra.mxu1 %v1313_v39  ;;  %590 = vmatprep.mubr.bf16.mxu0 %v1314_v40 }
  0x2d   :  { %711 = vmatprep.mubr.bf16.mxu1 %v1316_v41 }
  0x33   :  { %591 = vmatmul.mubr.bf16.gmra.mxu0 %v1318_v42 }
  0x34   :  { %712 = vmatmul.mubr.bf16.gmra.mxu1 %v1319_v43  ;;  %598 = vmatprep.mubr.bf16.mxu0 %v1320_v44 }
  0x35   :  { %719 = vmatprep.mubr.bf16.mxu1 %v1322_v45 }
  0x3b   :  { %599 = vmatmul.mubr.bf16.gmra.mxu0 %v1324_v46 }
  0x3c   :  { %720 = vmatmul.mubr.bf16.gmra.mxu1 %v1325_v47  ;;  %606 = vmatprep.mubr.bf16.mxu0 %v1326_v48 }
  0x3d   :  { %727 = vmatprep.mubr.bf16.mxu1 %v1328_v49 }
  0x43   :  { %607 = vmatmul.mubr.bf16.gmra.mxu0 %v1330_v50 }
  0x44   :  { %728 = vmatmul.mubr.bf16.gmra.mxu1 %v1331_v51  ;;  %614 = vmatprep.mubr.bf16.mxu0 %v1332_v52 }
  0x45   :  { %735 = vmatprep.mubr.bf16.mxu1 %v1334_v53 }
  0x4b   :  { %615 = vmatmul.mubr.bf16.gmra.mxu0 %v1336_v54 }
  0x4c   :  { %736 = vmatmul.mubr.bf16.gmra.mxu1 %v1337_v55  ;;  %622 = vmatprep.mubr.bf16.mxu0 %v1338_v56 }
  0x4d   :  { %743 = vmatprep.mubr.bf16.mxu1 %v1340_v57 }
  0x53   :  { %623 = vmatmul.mubr.bf16.gmra.mxu0 %v1342_v58 }
  0x54   :  { %744 = vmatmul.mubr.bf16.gmra.mxu1 %v1343_v59  ;;  %630 = vmatprep.mubr.bf16.mxu0 %v1344_v60 }
  0x55   :  { %751 = vmatprep.mubr.bf16.mxu1 %v1346_v61 }
  0x5b   :  { %631 = vmatmul.mubr.bf16.gmra.mxu0 %v1348_v62 }
  0x5c   :  { %752 = vmatmul.mubr.bf16.gmra.mxu1 %v1349_v63  ;;  %638 = vmatprep.mubr.bf16.mxu0 %v1350_v0 }
  0x5d   :  { %759 = vmatprep.mubr.bf16.mxu1 %v1352_v1 }
  0x63   :  { %639 = vmatmul.mubr.bf16.gmra.mxu0 %v1354_v2 }
  0x64   :  { %760 = vmatmul.mubr.bf16.gmra.mxu1 %v1355_v3  ;;  %646 = vmatprep.mubr.bf16.mxu0 %v1356_v4 }
  0x65   :  { %767 = vmatprep.mubr.bf16.mxu1 %v1358_v5 }
  0x6b   :  { %647 = vmatmul.mubr.bf16.gmra.mxu0 %v1360_v6 }
  0x6c   :  { %768 = vmatmul.mubr.bf16.gmra.mxu1 %v1361_v7  ;;  %654 = vmatprep.mubr.bf16.mxu0 %v1362_v8 }
  0x6d   :  { %775 = vmatprep.mubr.bf16.mxu1 %v1364_v9 }
  0x73   :  { %655 = vmatmul.mubr.bf16.gmra.mxu0 %v1366_v10 }
  0x74   :  { %776 = vmatmul.mubr.bf16.gmra.mxu1 %v1367_v11 }
  0xe3   :  { %v1122_v12 = vpop.f32.mrf.mxu0 }
  0xe4   :  { %v1204_v13 = vpop.f32.mrf.mxu1 }
  0xe5   :  { %v1123_v15 = vpop.f32.mrf.mxu0 }
  0xe6   :  { %v1124_v16 = vadd.f32 %v1123_v15, %v1122_v12  ;;  %v1205_v17 = vpop.f32.mrf.mxu1 }
  0xe7   :  { %v1125_v18 = vpop.f32.mrf.mxu0  ;;  %v1206_v22 = vadd.f32 %v1205_v17, %v1204_v13 }
  0xe8   :  { %v577_v19 = vadd.f32 %v1124_v16, %v1619_v14  ;;  %v1207_v20 = vpop.f32.mrf.mxu1 }
  0xe9   :  { %v1126_v21 = vpop.f32.mrf.mxu0 }
  0xea   :  { %v1127_v23 = vadd.f32 %v1126_v21, %v1125_v18  ;;  %v1208_v24 = vpop.f32.mrf.mxu1  ;;  %v698_v26 = vadd.f32 %v1206_v22, %v577_v19 }
  0xeb   :  { %v1128_v25 = vpop.f32.mrf.mxu0  ;;  %v1209_v28 = vadd.f32 %v1208_v24, %v1207_v20 }
  0xec   :  { %v580_v27 = vadd.f32 %v1127_v23, %v1619_v14  ;;  %v1210_v29 = vpop.f32.mrf.mxu1  ;;  %v784_v35 = vmax.f32 %v698_v26, 0.0 }
  0xed   :  { %v1129_v30 = vpop.f32.mrf.mxu0 }
  0xee   :  { %v701_v31 = vadd.f32 %v1209_v28, %v580_v27  ;;  %v1130_v32 = vadd.f32 %v1129_v30, %v1128_v25  ;;  %v1211_v33 = vpop.f32.mrf.mxu1 }
  0xef   :  { %v1131_v34 = vpop.f32.mrf.mxu0  ;;  %v1212_v41 = vadd.f32 %v1211_v33, %v1210_v29 }
  0xf0   :  { %v785_v36 = vmax.f32 %v701_v31, 0.0  ;;  %v585_v37 = vadd.f32 %v1130_v32, %v1619_v14  ;;  %v1213_v38 = vpop.f32.mrf.mxu1 }
  0xf1   :  { %v1132_v39 = vpop.f32.mrf.mxu0 }
  0xf2   :  { %v1044_v40 = vpack.c.bf16 %v785_v36, %v784_v35  ;;  %v1133_v42 = vadd.f32 %v1132_v39, %v1131_v34  ;;  %v1214_v43 = vpop.f32.mrf.mxu1  ;;  %v706_v45 = vadd.f32 %v1212_v41, %v585_v37 }
  0xf3   :  { %v1134_v44 = vpop.f32.mrf.mxu0  ;;  %v1215_v47 = vadd.f32 %v1214_v43, %v1213_v38 }
  0xf4   :  { %1045 = vst [vmem:[%s1679_s3] sm:$0xff] %v1044_v40   ;;  %v588_v46 = vadd.f32 %v1133_v42, %v1619_v14  ;;  %v1216_v48 = vpop.f32.mrf.mxu1  ;;  %v786_v54 = vmax.f32 %v706_v45, 0.0 }
  0xf5   :  { %v1135_v49 = vpop.f32.mrf.mxu0 }
  0xf6   :  { %v709_v50 = vadd.f32 %v1215_v47, %v588_v46  ;;  %v1136_v51 = vadd.f32 %v1135_v49, %v1134_v44  ;;  %v1217_v52 = vpop.f32.mrf.mxu1 }
  0xf7   :  { %v1137_v53 = vpop.f32.mrf.mxu0  ;;  %v1218_v60 = vadd.f32 %v1217_v52, %v1216_v48 }
  0xf8   :  { %v787_v55 = vmax.f32 %v709_v50, 0.0  ;;  %v593_v56 = vadd.f32 %v1136_v51, %v1619_v14  ;;  %v1219_v57 = vpop.f32.mrf.mxu1 }
  0xf9   :  { %v1138_v58 = vpop.f32.mrf.mxu0 }
  0xfa   :  { %v1049_v59 = vpack.c.bf16 %v787_v55, %v786_v54  ;;  %v1139_v61 = vadd.f32 %v1138_v58, %v1137_v53  ;;  %v1220_v62 = vpop.f32.mrf.mxu1  ;;  %v714_v0 = vadd.f32 %v1218_v60, %v593_v56 }
  0xfb   :  { %v1140_v63 = vpop.f32.mrf.mxu0  ;;  %v1221_v2 = vadd.f32 %v1220_v62, %v1219_v57 }
  0xfc   :  { %1096 = vst [vmem:[%s1679_s3 + $0x8] sm:$0xff] %v1049_v59   ;;  %v596_v1 = vadd.f32 %v1139_v61, %v1619_v14  ;;  %v1222_v3 = vpop.f32.mrf.mxu1  ;;  %v788_v9 = vmax.f32 %v714_v0, 0.0 }
  0xfd   :  { %v1141_v4 = vpop.f32.mrf.mxu0 }
  0xfe   :  { %v717_v5 = vadd.f32 %v1221_v2, %v596_v1  ;;  %v1142_v6 = vadd.f32 %v1141_v4, %v1140_v63  ;;  %v1223_v7 = vpop.f32.mrf.mxu1 }
  0xff   :  { %v1143_v8 = vpop.f32.mrf.mxu0  ;;  %v1224_v16 = vadd.f32 %v1223_v7, %v1222_v3 }
 0x100   :  { %v789_v10 = vmax.f32 %v717_v5, 0.0  ;;  %v601_v11 = vadd.f32 %v1142_v6, %v1619_v14  ;;  %v1225_v12 = vpop.f32.mrf.mxu1 }
 0x101   :  { %v1144_v13 = vpop.f32.mrf.mxu0 }
 0x102   :  { %v1054_v15 = vpack.c.bf16 %v789_v10, %v788_v9  ;;  %v1145_v17 = vadd.f32 %v1144_v13, %v1143_v8  ;;  %v1226_v18 = vpop.f32.mrf.mxu1  ;;  %v722_v20 = vadd.f32 %v1224_v16, %v601_v11 }
 0x103   :  { %v1146_v19 = vpop.f32.mrf.mxu0  ;;  %v1227_v22 = vadd.f32 %v1226_v18, %v1225_v12 }
 0x104   :  { %1097 = vst [vmem:[%s1679_s3 + $0x10] sm:$0xff] %v1054_v15   ;;  %v604_v21 = vadd.f32 %v1145_v17, %v1619_v14  ;;  %v1228_v23 = vpop.f32.mrf.mxu1  ;;  %v790_v29 = vmax.f32 %v722_v20, 0.0 }
 0x105   :  { %v1147_v24 = vpop.f32.mrf.mxu0 }
 0x106   :  { %v725_v25 = vadd.f32 %v1227_v22, %v604_v21  ;;  %v1148_v26 = vadd.f32 %v1147_v24, %v1146_v19  ;;  %v1229_v27 = vpop.f32.mrf.mxu1 }
 0x107   :  { %v1149_v28 = vpop.f32.mrf.mxu0  ;;  %v1230_v35 = vadd.f32 %v1229_v27, %v1228_v23 }
 0x108   :  { %v791_v30 = vmax.f32 %v725_v25, 0.0  ;;  %v609_v31 = vadd.f32 %v1148_v26, %v1619_v14  ;;  %v1231_v32 = vpop.f32.mrf.mxu1 }
 0x109   :  { %v1150_v33 = vpop.f32.mrf.mxu0 }
 0x10a   :  { %v1059_v34 = vpack.c.bf16 %v791_v30, %v790_v29  ;;  %v1151_v36 = vadd.f32 %v1150_v33, %v1149_v28  ;;  %v1232_v37 = vpop.f32.mrf.mxu1  ;;  %v730_v39 = vadd.f32 %v1230_v35, %v609_v31 }
 0x10b   :  { %v1152_v38 = vpop.f32.mrf.mxu0  ;;  %v1233_v41 = vadd.f32 %v1232_v37, %v1231_v32 }
 0x10c   :  { %1098 = vst [vmem:[%s1679_s3 + $0x18] sm:$0xff] %v1059_v34   ;;  %v612_v40 = vadd.f32 %v1151_v36, %v1619_v14  ;;  %v1234_v42 = vpop.f32.mrf.mxu1  ;;  %v792_v48 = vmax.f32 %v730_v39, 0.0 }
 0x10d   :  { %v1153_v43 = vpop.f32.mrf.mxu0 }
 0x10e   :  { %v733_v44 = vadd.f32 %v1233_v41, %v612_v40  ;;  %v1154_v45 = vadd.f32 %v1153_v43, %v1152_v38  ;;  %v1235_v46 = vpop.f32.mrf.mxu1 }
 0x10f   :  { %v1155_v47 = vpop.f32.mrf.mxu0  ;;  %v1236_v54 = vadd.f32 %v1235_v46, %v1234_v42 }
 0x110   :  { %v793_v49 = vmax.f32 %v733_v44, 0.0  ;;  %v617_v50 = vadd.f32 %v1154_v45, %v1619_v14  ;;  %v1237_v51 = vpop.f32.mrf.mxu1 }
 0x111   :  { %v1156_v52 = vpop.f32.mrf.mxu0 }
 0x112   :  { %v1064_v53 = vpack.c.bf16 %v793_v49, %v792_v48  ;;  %v1157_v55 = vadd.f32 %v1156_v52, %v1155_v47  ;;  %v1238_v56 = vpop.f32.mrf.mxu1  ;;  %v738_v58 = vadd.f32 %v1236_v54, %v617_v50 }
 0x113   :  { %v1158_v57 = vpop.f32.mrf.mxu0  ;;  %v1239_v60 = vadd.f32 %v1238_v56, %v1237_v51 }
 0x114   :  { %1099 = vst [vmem:[%s1679_s3 + $0x20] sm:$0xff] %v1064_v53   ;;  %v620_v59 = vadd.f32 %v1157_v55, %v1619_v14  ;;  %v1240_v61 = vpop.f32.mrf.mxu1  ;;  %v794_v3 = vmax.f32 %v738_v58, 0.0 }
 0x115   :  { %v1159_v62 = vpop.f32.mrf.mxu0 }
 0x116   :  { %v741_v63 = vadd.f32 %v1239_v60, %v620_v59  ;;  %v1160_v0 = vadd.f32 %v1159_v62, %v1158_v57  ;;  %v1241_v1 = vpop.f32.mrf.mxu1 }
 0x117   :  { %v1161_v2 = vpop.f32.mrf.mxu0  ;;  %v1242_v9 = vadd.f32 %v1241_v1, %v1240_v61 }
 0x118   :  { %v795_v4 = vmax.f32 %v741_v63, 0.0  ;;  %v625_v5 = vadd.f32 %v1160_v0, %v1619_v14  ;;  %v1243_v6 = vpop.f32.mrf.mxu1 }
 0x119   :  { %v1162_v7 = vpop.f32.mrf.mxu0 }
 0x11a   :  { %v1069_v8 = vpack.c.bf16 %v795_v4, %v794_v3  ;;  %v1163_v10 = vadd.f32 %v1162_v7, %v1161_v2  ;;  %v1244_v11 = vpop.f32.mrf.mxu1  ;;  %v746_v13 = vadd.f32 %v1242_v9, %v625_v5 }
 0x11b   :  { %v1164_v12 = vpop.f32.mrf.mxu0  ;;  %v1245_v16 = vadd.f32 %v1244_v11, %v1243_v6 }
 0x11c   :  { %1100 = vst [vmem:[%s1679_s3 + $0x28] sm:$0xff] %v1069_v8   ;;  %v628_v15 = vadd.f32 %v1163_v10, %v1619_v14  ;;  %v1246_v17 = vpop.f32.mrf.mxu1  ;;  %v796_v23 = vmax.f32 %v746_v13, 0.0 }
 0x11d   :  { %v1165_v18 = vpop.f32.mrf.mxu0 }
 0x11e   :  { %v749_v19 = vadd.f32 %v1245_v16, %v628_v15  ;;  %v1166_v20 = vadd.f32 %v1165_v18, %v1164_v12  ;;  %v1247_v21 = vpop.f32.mrf.mxu1 }
 0x11f   :  { %v1167_v22 = vpop.f32.mrf.mxu0  ;;  %v1248_v29 = vadd.f32 %v1247_v21, %v1246_v17 }
 0x120   :  { %v797_v24 = vmax.f32 %v749_v19, 0.0  ;;  %v633_v25 = vadd.f32 %v1166_v20, %v1619_v14  ;;  %v1249_v26 = vpop.f32.mrf.mxu1 }
 0x121   :  { %v1168_v27 = vpop.f32.mrf.mxu0 }
 0x122   :  { %v1074_v28 = vpack.c.bf16 %v797_v24, %v796_v23  ;;  %v1169_v30 = vadd.f32 %v1168_v27, %v1167_v22  ;;  %v1250_v31 = vpop.f32.mrf.mxu1  ;;  %v754_v33 = vadd.f32 %v1248_v29, %v633_v25 }
 0x123   :  { %v1170_v32 = vpop.f32.mrf.mxu0  ;;  %v1251_v35 = vadd.f32 %v1250_v31, %v1249_v26 }
 0x124   :  { %1101 = vst [vmem:[%s1679_s3 + $0x30] sm:$0xff] %v1074_v28   ;;  %v636_v34 = vadd.f32 %v1169_v30, %v1619_v14  ;;  %v1252_v36 = vpop.f32.mrf.mxu1  ;;  %v798_v42 = vmax.f32 %v754_v33, 0.0 }
 0x125   :  { %v1171_v37 = vpop.f32.mrf.mxu0 }
 0x126   :  { %v757_v38 = vadd.f32 %v1251_v35, %v636_v34  ;;  %v1172_v39 = vadd.f32 %v1171_v37, %v1170_v32  ;;  %v1253_v40 = vpop.f32.mrf.mxu1 }
 0x127   :  { %v1173_v41 = vpop.f32.mrf.mxu0  ;;  %v1254_v48 = vadd.f32 %v1253_v40, %v1252_v36 }
 0x128   :  { %v799_v43 = vmax.f32 %v757_v38, 0.0  ;;  %v641_v44 = vadd.f32 %v1172_v39, %v1619_v14  ;;  %v1255_v45 = vpop.f32.mrf.mxu1 }
 0x129   :  { %v1174_v46 = vpop.f32.mrf.mxu0 }
 0x12a   :  { %v1079_v47 = vpack.c.bf16 %v799_v43, %v798_v42  ;;  %v1175_v49 = vadd.f32 %v1174_v46, %v1173_v41  ;;  %v1256_v50 = vpop.f32.mrf.mxu1  ;;  %v762_v52 = vadd.f32 %v1254_v48, %v641_v44 }
 0x12b   :  { %v1176_v51 = vpop.f32.mrf.mxu0  ;;  %v1257_v54 = vadd.f32 %v1256_v50, %v1255_v45 }
 0x12c   :  { %1102 = vst [vmem:[%s1679_s3 + $0x38] sm:$0xff] %v1079_v47   ;;  %v644_v53 = vadd.f32 %v1175_v49, %v1619_v14  ;;  %v1258_v55 = vpop.f32.mrf.mxu1  ;;  %v800_v61 = vmax.f32 %v762_v52, 0.0 }
 0x12d   :  { %v1177_v56 = vpop.f32.mrf.mxu0 }
 0x12e   :  { %v765_v57 = vadd.f32 %v1257_v54, %v644_v53  ;;  %v1178_v58 = vadd.f32 %v1177_v56, %v1176_v51  ;;  %v1259_v59 = vpop.f32.mrf.mxu1 }
 0x12f   :  { %v1179_v60 = vpop.f32.mrf.mxu0  ;;  %v1260_v3 = vadd.f32 %v1259_v59, %v1258_v55 }
 0x130   :  { %v801_v62 = vmax.f32 %v765_v57, 0.0  ;;  %v649_v63 = vadd.f32 %v1178_v58, %v1619_v14  ;;  %v1261_v0 = vpop.f32.mrf.mxu1 }
 0x131   :  { %v1180_v1 = vpop.f32.mrf.mxu0 }
 0x132   :  { %v1084_v2 = vpack.c.bf16 %v801_v62, %v800_v61  ;;  %v1181_v4 = vadd.f32 %v1180_v1, %v1179_v60  ;;  %v1262_v5 = vpop.f32.mrf.mxu1  ;;  %v770_v7 = vadd.f32 %v1260_v3, %v649_v63 }
 0x133   :  { %v1182_v6 = vpop.f32.mrf.mxu0  ;;  %v1263_v9 = vadd.f32 %v1262_v5, %v1261_v0 }
 0x134   :  { %1103 = vst [vmem:[%s1679_s3 + $0x40] sm:$0xff] %v1084_v2   ;;  %v652_v8 = vadd.f32 %v1181_v4, %v1619_v14  ;;  %v1264_v10 = vpop.f32.mrf.mxu1  ;;  %v802_v17 = vmax.f32 %v770_v7, 0.0 }
 0x135   :  { %v1183_v11 = vpop.f32.mrf.mxu0 }
 0x136   :  { %v773_v12 = vadd.f32 %v1263_v9, %v652_v8  ;;  %v1184_v13 = vadd.f32 %v1183_v11, %v1182_v6  ;;  %v1265_v15 = vpop.f32.mrf.mxu1 }
 0x137   :  { %v1185_v16 = vpop.f32.mrf.mxu0  ;;  %v1266_v23 = vadd.f32 %v1265_v15, %v1264_v10 }
 0x138   :  { %v803_v18 = vmax.f32 %v773_v12, 0.0  ;;  %v657_v19 = vadd.f32 %v1184_v13, %v1619_v14  ;;  %v1267_v20 = vpop.f32.mrf.mxu1 }
 0x139   :  { %v1186_v21 = vpop.f32.mrf.mxu0 }
 0x13a   :  { %v1089_v22 = vpack.c.bf16 %v803_v18, %v802_v17  ;;  %v1187_v24 = vadd.f32 %v1186_v21, %v1185_v16  ;;  %v1268_v25 = vpop.f32.mrf.mxu1  ;;  %v778_v26 = vadd.f32 %v1266_v23, %v657_v19 }
 0x13b   :  { %v1269_v28 = vadd.f32 %v1268_v25, %v1267_v20 }
 0x13c   :  { %1104 = vst [vmem:[%s1679_s3 + $0x48] sm:$0xff] %v1089_v22   ;;  %v660_v27 = vadd.f32 %v1187_v24, %v1619_v14  ;;  %v804_v30 = vmax.f32 %v778_v26, 0.0 }
 0x13e   :  { %v781_v29 = vadd.f32 %v1269_v28, %v660_v27 }
 0x140   :  { %v805_v31 = vmax.f32 %v781_v29, 0.0 }
 0x142   :  { %v1094_v32 = vpack.c.bf16 %v805_v31, %v804_v30 }
 0x144   :  { %1105 = vst [vmem:[%s1679_s3 + $0x50] sm:$0xff] %v1094_v32  }

// kernel: _lambda_.6
= control target key start
LH: loop header
LB: loop body
LE: loop exit
PB: predicated region body
PF: predicated region fallthrough
CT: control target
= control target key end

     0   :  { %v1348_v24 = vmov 0.0   ;;  %vm1349_vm0 = vmmov 0   ;;  %s1705_s1 = inlined_call_operand.vmem [shape: bf16[640,128], index: 1, kind: input, shape index: {}]   ;;  %s1706_s0 = inlined_call_operand.vmem [shape: bf16[112,640], index: 0, kind: input, shape index: {}]   ;;  %s1707_s2 = inlined_call_operand.vmem [shape: f32[1,128], index: 2, kind: input, shape index: {}]   ;;  %s1708_s3 = inlined_call_operand.vmem [shape: bf16[112,128], index: 3, kind: output, shape index: {}]  }
   0x1   :  { %v1259_v0 = vld [vmem:[%s1705_s1 + $0x78] sm:$0xff]   ;;  %v1261_v2 = vld [vmem:[%s1705_s1 + $0x70] sm:$0xff]   ;;  %v1263_v4 = vld [vmem:[%s1705_s1 + $0x68] sm:$0xff]  }
   0x2   :  { %v1260_v1 = vld [vmem:[%s1705_s1 + $0x38] sm:$0xff]   ;;  %1066 = vmatprep.subr.bf16.mxu0 %v1259_v0  ;;  %1241 = vmatprep.subr.bf16.mxu1 %v1259_v0  ;;  %v1262_v3 = vld [vmem:[%s1705_s1 + $0x30] sm:$0xff]   ;;  %v1264_v5 = vld [vmem:[%s1705_s1 + $0x28] sm:$0xff]  }
   0x3   :  { %1067 = vmatpush3.bf16.msra.mxu0 %v1260_v1  ;;  %1249 = vmatpush3.bf16.msra.mxu1 %v1260_v1  ;;  %v1265_v6 = vld [vmem:[%s1705_s1 + $0x60] sm:$0xff]   ;;  %v1267_v8 = vld [vmem:[%s1705_s1 + $0x58] sm:$0xff]   ;;  %v1269_v10 = vld [vmem:[%s1705_s1 + $0x50] sm:$0xff]  }
   0x4   :  { %1068 = vmatprep.subr.bf16.mxu0 %v1261_v2  ;;  %1242 = vmatprep.subr.bf16.mxu1 %v1261_v2  ;;  %v1266_v7 = vld [vmem:[%s1705_s1 + $0x20] sm:$0xff]   ;;  %v1268_v9 = vld [vmem:[%s1705_s1 + $0x18] sm:$0xff]   ;;  %v1270_v13 = vld [vmem:[%s1705_s1 + $0x10] sm:$0xff]  }
   0x5   :  { %v1277_v11 = vld [vmem:[%s1706_s0 + $0x4] ss:$20 sps:$4 sm:$0xff]   ;;  %v1271_v14 = vld [vmem:[%s1705_s1 + $0x48] sm:$0xff]   ;;  %v1275_v18 = vld [vmem:[%s1706_s0] ss:$20 sps:$4 sm:$0xff]  }
   0x6   :  { %v1280_v12 = vld [vmem:[%s1706_s0 + $0xa4] ss:$20 sps:$4 sm:$0xff]   ;;  %598 = vmatprep.mubr.bf16.mxu0 %v1277_v11  ;;  %v1272_v15 = vld [vmem:[%s1705_s1 + $0x8] sm:$0xff]   ;;  %v1278_v19 = vld [vmem:[%s1706_s0 + $0xa0] ss:$20 sps:$4 sm:$0xff]  }
   0x7   :  { %1069 = vmatpush3.bf16.msra.mxu0 %v1262_v3  ;;  %1250 = vmatpush3.bf16.msra.mxu1 %v1262_v3  ;;  %v1273_v16 = vld [vmem:[%s1705_s1 + $0x40] sm:$0xff]   ;;  %v1281_v20 = vld [vmem:[%s1705_s1 + $0xf8] sm:$0xff]   ;;  %v1284_v23 = vld [vmem:[%s1705_s1 + $0xf0] sm:$0xff]  }
   0x8   :  { %1070 = vmatprep.subr.bf16.mxu0 %v1263_v4  ;;  %1243 = vmatprep.subr.bf16.mxu1 %v1263_v4  ;;  %v1274_v17 = vld [vmem:[%s1705_s1] sm:$0xff]   ;;  %v1282_v21 = vld [vmem:[%s1705_s1 + $0xb8] sm:$0xff]   ;;  %v1285_v27 = vld [vmem:[%s1705_s1 + $0xb0] sm:$0xff]  }
   0x9   :  { %630 = vmatprep.mubr.bf16.mxu1 %v1280_v12  ;;  %v1283_v22 = vld [vmem:[%s1705_s1 + $0x138] sm:$0xff]   ;;  %v1287_v25 = vld [vmem:[%s1706_s0 + $0x2c] ss:$20 sps:$4 sm:$0xff]   ;;  %v1286_v28 = vld [vmem:[%s1705_s1 + $0x130] sm:$0xff]  }
   0xa   :  { %v1291_v26 = vld [vmem:[%s1706_s0 + $0xcc] ss:$20 sps:$4 sm:$0xff]   ;;  %v1289_v29 = vld [vmem:[%s1706_s0 + $0x28] ss:$20 sps:$4 sm:$0xff]   ;;  %v1301_v39 = vld [vmem:[%s1706_s0 + $0x50] ss:$20 sps:$4 sm:$0xff]  }
   0xb   :  { %1071 = vmatpush3.bf16.msra.mxu0 %v1264_v5  ;;  %1251 = vmatpush3.bf16.msra.mxu1 %v1264_v5  ;;  %v1290_v30 = vld [vmem:[%s1705_s1 + $0xe8] sm:$0xff]   ;;  %v1296_v34 = vld [vmem:[%s1705_s1 + $0xe0] sm:$0xff]   ;;  %v1302_v40 = vld [vmem:[%s1705_s1 + $0xd8] sm:$0xff]  }
   0xc   :  { %1072 = vmatprep.subr.bf16.mxu0 %v1265_v6  ;;  %1244 = vmatprep.subr.bf16.mxu1 %v1265_v6  ;;  %v1293_v31 = vld [vmem:[%s1705_s1 + $0xa8] sm:$0xff]   ;;  %v1297_v37 = vld [vmem:[%s1705_s1 + $0xa0] sm:$0xff]   ;;  %v1305_v41 = vld [vmem:[%s1705_s1 + $0x98] sm:$0xff]  }
   0xd   :  { %v1294_v32 = vld [vmem:[%s1705_s1 + $0x128] sm:$0xff]   ;;  %v1298_v38 = vld [vmem:[%s1705_s1 + $0x120] sm:$0xff]   ;;  %v1306_v43 = vld [vmem:[%s1705_s1 + $0x118] sm:$0xff]  }
   0xe   :  { %v1295_v33 = vld [vmem:[%s1706_s0 + $0xc8] ss:$20 sps:$4 sm:$0xff]   ;;  %v1307_v42 = vld [vmem:[%s1706_s0 + $0xf0] ss:$20 sps:$4 sm:$0xff]   ;;  %v1322_v47 = vld [vmem:[%s1706_s0 + $0xc] ss:$20 sps:$4 sm:$0xff]  }
   0xf   :  { %1073 = vmatpush3.bf16.msra.mxu0 %v1266_v7  ;;  %1252 = vmatpush3.bf16.msra.mxu1 %v1266_v7  ;;  %v1299_v35 = vld [vmem:[%s1706_s0 + $0x54] ss:$20 sps:$4 sm:$0xff]   ;;  %v1311_v45 = vld [vmem:[%s1706_s0 + $0x7c] ss:$20 sps:$4 sm:$0xff]   ;;  %v1313_v50 = vld [vmem:[%s1706_s0 + $0x78] ss:$20 sps:$4 sm:$0xff]  }
  0x10   :  { %1074 = vmatprep.subr.bf16.mxu0 %v1267_v8  ;;  %1245 = vmatprep.subr.bf16.mxu1 %v1267_v8  ;;  %v1303_v36 = vld [vmem:[%s1706_s0 + $0xf4] ss:$20 sps:$4 sm:$0xff]   ;;  %v1317_v53 = vld [vmem:[%s1705_s1 + $0xc0] sm:$0xff]   ;;  %v1327_v60 = vld [vmem:[%s1706_s0 + $0x38] ss:$20 sps:$4 sm:$0xff]  }
  0x11   :  { %v1308_v44 = vld [vmem:[%s1705_s1 + $0xd0] sm:$0xff]   ;;  %v1314_v49 = vld [vmem:[%s1705_s1 + $0xc8] sm:$0xff]   ;;  %v1318_v54 = vld [vmem:[%s1705_s1 + $0x80] sm:$0xff]  }
  0x12   :  { %v1309_v46 = vld [vmem:[%s1705_s1 + $0x90] sm:$0xff]   ;;  %v1315_v51 = vld [vmem:[%s1705_s1 + $0x88] sm:$0xff]   ;;  %v1319_v55 = vld [vmem:[%s1705_s1 + $0x100] sm:$0xff]  }
  0x13   :  { %1075 = vmatpush3.bf16.msra.mxu0 %v1268_v9  ;;  %1253 = vmatpush3.bf16.msra.mxu1 %v1268_v9  ;;  %v1310_v48 = vld [vmem:[%s1705_s1 + $0x110] sm:$0xff]   ;;  %v1316_v52 = vld [vmem:[%s1705_s1 + $0x108] sm:$0xff]   ;;  %v1332_v0 = vld [vmem:[%s1706_s0 + $0x84] ss:$20 sps:$4 sm:$0xff]  }
  0x14   :  { %1076 = vmatprep.subr.bf16.mxu0 %v1269_v10  ;;  %1246 = vmatprep.subr.bf16.mxu1 %v1269_v10  ;;  %v1320_v56 = vld [vmem:[%s1706_s0 + $0x8] ss:$20 sps:$4 sm:$0xff]   ;;  %v1323_v57 = vld [vmem:[%s1706_s0 + $0x10] ss:$20 sps:$4 sm:$0xff]   ;;  %v1330_v62 = vld [vmem:[%s1706_s0 + $0x58] ss:$20 sps:$4 sm:$0xff]  }
  0x15   :  { %v1324_v58 = vld [vmem:[%s1706_s0 + $0x34] ss:$20 sps:$4 sm:$0xff]   ;;  %v1326_v59 = vld [vmem:[%s1706_s0 + $0x30] ss:$20 sps:$4 sm:$0xff]   ;;  %v1336_v3 = vld [vmem:[%s1706_s0 + $0xac] ss:$20 sps:$4 sm:$0xff]  }
  0x16   :  { %v1328_v61 = vld [vmem:[%s1706_s0 + $0x5c] ss:$20 sps:$4 sm:$0xff]   ;;  %v1331_v63 = vld [vmem:[%s1706_s0 + $0x60] ss:$20 sps:$4 sm:$0xff]   ;;  %v1343_v8 = vld [vmem:[%s1706_s0 + $0xd8] ss:$20 sps:$4 sm:$0xff]  }
  0x17   :  { %1077 = vmatpush3.bf16.msra.mxu0 %v1270_v13  ;;  %1254 = vmatpush3.bf16.msra.mxu1 %v1270_v13  ;;  %v1334_v1 = vld [vmem:[%s1706_s0 + $0x80] ss:$20 sps:$4 sm:$0xff]   ;;  %v1335_v2 = vld [vmem:[%s1706_s0 + $0x88] ss:$20 sps:$4 sm:$0xff]   ;;  %v1339_v5 = vld [vmem:[%s1706_s0 + $0xb0] ss:$20 sps:$4 sm:$0xff]  }
  0x18   :  { %1078 = vmatprep.subr.bf16.mxu0 %v1271_v14  ;;  %1247 = vmatprep.subr.bf16.mxu1 %v1271_v14  ;;  %v1338_v4 = vld [vmem:[%s1706_s0 + $0xa8] ss:$20 sps:$4 sm:$0xff]   ;;  %v1342_v7 = vld [vmem:[%s1706_s0 + $0xd0] ss:$20 sps:$4 sm:$0xff]   ;;  %v1346_v10 = vld [vmem:[%s1706_s0 + $0xf8] ss:$20 sps:$4 sm:$0xff]  }
  0x19   :  { %v1340_v6 = vld [vmem:[%s1706_s0 + $0xd4] ss:$20 sps:$4 sm:$0xff]   ;;  %v1344_v9 = vld [vmem:[%s1706_s0 + $0xfc] ss:$20 sps:$4 sm:$0xff]  }
  0x1a   :  { %v1347_v11 = vld [vmem:[%s1706_s0 + $0x100] ss:$20 sps:$4 sm:$0xff]  }
  0x1b   :  { %1079 = vmatpush3.bf16.msra.mxu0 %v1272_v15  ;;  %1255 = vmatpush3.bf16.msra.mxu1 %v1272_v15 }
  0x1c   :  { %1080 = vmatprep.subr.bf16.mxu0 %v1273_v16  ;;  %1248 = vmatprep.subr.bf16.mxu1 %v1273_v16 }
  0x1f   :  { %1081 = vmatpush3.bf16.msra.mxu0 %v1274_v17  ;;  %1256 = vmatpush3.bf16.msra.mxu1 %v1274_v17 }
  0x20   :  { %1124 = vmatprep.subr.bf16.mxu1 %v1281_v20  ;;  %1197 = vmatprep.subr.bf16.mxu0 %v1348_v24 }
  0x22   :  { %599 = vmatmul.mubr.bf16.vlgmr.msra.gmra.mxu0 %v1275_v18  ;;  %631 = vmatmul.mubr.bf16.vlgmr.msra.gmra.mxu1 %v1278_v19 }
  0x23   :  { %1125 = vmatpush3.bf16.msra.mxu1 %v1282_v21  ;;  %1198 = vmatpush3.bf16.msra.mxu0 %v1283_v22 }
  0x24   :  { %1126 = vmatprep.subr.bf16.mxu1 %v1284_v23  ;;  %1199 = vmatprep.subr.bf16.mxu0 %v1348_v24 }
  0x25   :  { %606 = vmatprep.mubr.bf16.mxu0 %v1287_v25  ;;  %638 = vmatprep.mubr.bf16.mxu1 %v1291_v26 }
  0x27   :  { %1127 = vmatpush3.bf16.msra.mxu1 %v1285_v27  ;;  %1200 = vmatpush3.bf16.msra.mxu0 %v1286_v28 }
  0x28   :  { %1128 = vmatprep.subr.bf16.mxu1 %v1290_v30  ;;  %1201 = vmatprep.subr.bf16.mxu0 %v1348_v24 }
  0x2a   :  { %607 = vmatmul.mubr.bf16.gmra.mxu0 %v1289_v29  ;;  %639 = vmatmul.mubr.bf16.gmra.mxu1 %v1295_v33 }
  0x2b   :  { %1129 = vmatpush3.bf16.msra.mxu1 %v1293_v31  ;;  %1202 = vmatpush3.bf16.msra.mxu0 %v1294_v32 }
  0x2c   :  { %1130 = vmatprep.subr.bf16.mxu1 %v1296_v34  ;;  %1203 = vmatprep.subr.bf16.mxu0 %v1348_v24 }
  0x2d   :  { %614 = vmatprep.mubr.bf16.mxu0 %v1299_v35  ;;  %646 = vmatprep.mubr.bf16.mxu1 %v1303_v36 }
  0x2f   :  { %1131 = vmatpush3.bf16.msra.mxu1 %v1297_v37  ;;  %1204 = vmatpush3.bf16.msra.mxu0 %v1298_v38 }
  0x30   :  { %1132 = vmatprep.subr.bf16.mxu1 %v1302_v40  ;;  %1205 = vmatprep.subr.bf16.mxu0 %v1348_v24 }
  0x32   :  { %615 = vmatmul.mubr.bf16.gmra.mxu0 %v1301_v39  ;;  %647 = vmatmul.mubr.bf16.gmra.mxu1 %v1307_v42 }
  0x33   :  { %1133 = vmatpush3.bf16.msra.mxu1 %v1305_v41  ;;  %1206 = vmatpush3.bf16.msra.mxu0 %v1306_v43  ;;  %v1652_v43 = vld [vmem:[%s1707_s2] ss:$0 sm:$0xff] }
  0x34   :  { %1134 = vmatprep.subr.bf16.mxu1 %v1308_v44  ;;  %1207 = vmatprep.subr.bf16.mxu0 %v1348_v24 }
  0x35   :  { %622 = vmatprep.mubr.bf16.mxu0 %v1311_v45  ;;  %687 = vmatprep.mubr.bf16.mxu1 %v1322_v47 }
  0x37   :  { %1135 = vmatpush3.bf16.msra.mxu1 %v1309_v46  ;;  %1208 = vmatpush3.bf16.msra.mxu0 %v1310_v48 }
  0x38   :  { %1136 = vmatprep.subr.bf16.mxu1 %v1314_v49  ;;  %1209 = vmatprep.subr.bf16.mxu0 %v1348_v24 }
  0x3a   :  { %623 = vmatmul.mubr.bf16.gmra.mxu0 %v1313_v50 }
  0x3b   :  { %1137 = vmatpush3.bf16.msra.mxu1 %v1315_v51  ;;  %1210 = vmatpush3.bf16.msra.mxu0 %v1316_v52 }
  0x3c   :  { %1138 = vmatprep.subr.bf16.mxu1 %v1317_v53  ;;  %1211 = vmatprep.subr.bf16.mxu0 %v1348_v24 }
  0x3d   :  { %1213 = vmatprep.mubr.msk.bf16.mxu0 %vm1349_vm0, %v1348_v24 }
  0x3f   :  { %1139 = vmatpush3.bf16.msra.mxu1 %v1318_v54  ;;  %1212 = vmatpush3.bf16.msra.mxu0 %v1319_v55 }
  0x42   :  { %688 = vmatmul.mubr.bf16.vlgmr.msra.gmra.mxu1 %v1320_v56  ;;  %1214 = vmatmul.mubr.bf16.vlgmr.msra.gmra.mxu0 %v1323_v57 }
  0x43   :  { %695 = vmatprep.mubr.bf16.mxu1 %v1324_v58  ;;  %1217 = vmatprep.mubr.msk.bf16.mxu0 %vm1349_vm0, %v1348_v24 }
  0x4a   :  { %696 = vmatmul.mubr.bf16.gmra.mxu1 %v1326_v59  ;;  %1218 = vmatmul.mubr.bf16.gmra.mxu0 %v1327_v60 }
  0x4b   :  { %703 = vmatprep.mubr.bf16.mxu1 %v1328_v61  ;;  %1221 = vmatprep.mubr.msk.bf16.mxu0 %vm1349_vm0, %v1348_v24 }
  0x52   :  { %704 = vmatmul.mubr.bf16.gmra.mxu1 %v1330_v62  ;;  %1222 = vmatmul.mubr.bf16.gmra.mxu0 %v1331_v63 }
  0x53   :  { %711 = vmatprep.mubr.bf16.mxu1 %v1332_v0  ;;  %1225 = vmatprep.mubr.msk.bf16.mxu0 %vm1349_vm0, %v1348_v24 }
  0x5a   :  { %712 = vmatmul.mubr.bf16.gmra.mxu1 %v1334_v1  ;;  %1226 = vmatmul.mubr.bf16.gmra.mxu0 %v1335_v2 }
  0x5b   :  { %719 = vmatprep.mubr.bf16.mxu1 %v1336_v3  ;;  %1229 = vmatprep.mubr.msk.bf16.mxu0 %vm1349_vm0, %v1348_v24 }
  0x62   :  { %720 = vmatmul.mubr.bf16.gmra.mxu1 %v1338_v4  ;;  %1230 = vmatmul.mubr.bf16.gmra.mxu0 %v1339_v5 }
  0x63   :  { %727 = vmatprep.mubr.bf16.mxu1 %v1340_v6  ;;  %1233 = vmatprep.mubr.msk.bf16.mxu0 %vm1349_vm0, %v1348_v24 }
  0x6a   :  { %728 = vmatmul.mubr.bf16.gmra.mxu1 %v1342_v7  ;;  %1234 = vmatmul.mubr.bf16.gmra.mxu0 %v1343_v8 }
  0x6b   :  { %735 = vmatprep.mubr.bf16.mxu1 %v1344_v9  ;;  %1237 = vmatprep.mubr.msk.bf16.mxu0 %vm1349_vm0, %v1348_v24 }
  0x72   :  { %736 = vmatmul.mubr.bf16.gmra.mxu1 %v1346_v10  ;;  %1238 = vmatmul.mubr.bf16.gmra.mxu0 %v1347_v11 }
  0xe2   :  { %v1082_v12 = vpop.f32.mrf.mxu0  ;;  %v1617_v13 = vpop.f32.mrf.mxu1 }
  0xe4   :  { %v1083_v14 = vpop.f32.mrf.mxu0  ;;  %v1619_v15 = vpop.f32.mrf.mxu1 }
  0xe5   :  { %v1084_v40 = vadd.f32 %v1083_v14, %v1082_v12 }
  0xe6   :  { %v1085_v16 = vpop.f32.mrf.mxu0  ;;  %v1621_v17 = vpop.f32.mrf.mxu1 }
  0xe7   :  { %v601_v46 = vadd.f32 %v1084_v40, %v1652_v43 }
  0xe8   :  { %v1086_v18 = vpop.f32.mrf.mxu0  ;;  %v1623_v19 = vpop.f32.mrf.mxu1 }
  0xe9   :  { %v1087_v47 = vadd.f32 %v1086_v18, %v1085_v16 }
  0xea   :  { %v1088_v20 = vpop.f32.mrf.mxu0  ;;  %v1625_v21 = vpop.f32.mrf.mxu1 }
  0xeb   :  { %v604_v54 = vadd.f32 %v1087_v47, %v1652_v43 }
  0xec   :  { %v1089_v22 = vpop.f32.mrf.mxu0  ;;  %v1627_v23 = vpop.f32.mrf.mxu1 }
  0xed   :  { %v1090_v55 = vadd.f32 %v1089_v22, %v1088_v20 }
  0xee   :  { %v1091_v24 = vpop.f32.mrf.mxu0  ;;  %v1629_v25 = vpop.f32.mrf.mxu1 }
  0xef   :  { %v609_v63 = vadd.f32 %v1090_v55, %v1652_v43 }
  0xf0   :  { %v1092_v26 = vpop.f32.mrf.mxu0  ;;  %v1631_v27 = vpop.f32.mrf.mxu1 }
  0xf1   :  { %v1093_v0 = vadd.f32 %v1092_v26, %v1091_v24 }
  0xf2   :  { %v1094_v28 = vpop.f32.mrf.mxu0  ;;  %v1633_v30 = vpop.f32.mrf.mxu1 }
  0xf3   :  { %v612_v10 = vadd.f32 %v1093_v0, %v1652_v43 }
  0xf4   :  { %v1095_v29 = vpop.f32.mrf.mxu0  ;;  %v1635_v32 = vpop.f32.mrf.mxu1 }
  0xf5   :  { %v1096_v11 = vadd.f32 %v1095_v29, %v1094_v28 }
  0xf6   :  { %v1097_v31 = vpop.f32.mrf.mxu0  ;;  %v1639_v35 = vpop.f32.mrf.mxu1 }
  0xf7   :  { %v617_v40 = vadd.f32 %v1096_v11, %v1652_v43 }
  0xf8   :  { %v1098_v33 = vpop.f32.mrf.mxu0  ;;  %v1645_v38 = vpop.f32.mrf.mxu1 }
  0xfa   :  { %v1637_v34 = vpop.f32.mrf.mxu0 }
  0xfc   :  { %v1641_v36 = vpop.f32.mrf.mxu0 }
  0xfe   :  { %v1643_v37 = vpop.f32.mrf.mxu0 }
 0x100   :  { %v1647_v39 = vpop.f32.mrf.mxu0 }
 0x102   :  { %v1140_v41 = vpop.f32.mrf.mxu1  ;;  %v778_v42 = vpop.f32.mrf.mxu0 }
 0x104   :  { %v1141_v44 = vpop.f32.mrf.mxu1  ;;  %v1215_v45 = vpop.f32.mrf.mxu0 }
 0x105   :  { %v1142_v48 = vadd.f32 %v1141_v44, %v1140_v41  ;;  %v1099_v41 = vadd.f32 %v1098_v33, %v1097_v31 }
 0x106   :  { %v1143_v49 = vpop.f32.mrf.mxu1  ;;  %v781_v50 = vpop.f32.mrf.mxu0 }
 0x107   :  { %v690_v51 = vadd.f32 %v1142_v48, %v601_v46 }
 0x108   :  { %v1144_v52 = vpop.f32.mrf.mxu1  ;;  %v1216_v53 = vpop.f32.mrf.mxu0 }
 0x109   :  { %v1145_v56 = vadd.f32 %v1144_v52, %v1143_v49  ;;  %v779_v59 = vadd.f32 %v778_v42, %v690_v51  ;;  %v1102_v51 = vadd.f32 %v1641_v36, %v1637_v34 }
 0x10a   :  { %v1146_v57 = vpop.f32.mrf.mxu1  ;;  %v786_v58 = vpop.f32.mrf.mxu0 }
 0x10b   :  { %v693_v60 = vadd.f32 %v1145_v56, %v604_v54  ;;  %v833_v5 = vmax.f32 %v779_v59, 0.0  ;;  %v1105_v59 = vadd.f32 %v1647_v39, %v1643_v37 }
 0x10c   :  { %v1147_v61 = vpop.f32.mrf.mxu1  ;;  %v1219_v62 = vpop.f32.mrf.mxu0 }
 0x10d   :  { %v782_v1 = vadd.f32 %v781_v50, %v693_v60  ;;  %v1148_v2 = vadd.f32 %v1147_v61, %v1146_v57  ;;  %v620_v50 = vadd.f32 %v1099_v41, %v1652_v43  ;;  %v1114_v41 = vadd.f32 %v1627_v23, %v1625_v21 }
 0x10e   :  { %v1149_v3 = vpop.f32.mrf.mxu1  ;;  %v789_v4 = vpop.f32.mrf.mxu0 }
 0x10f   :  { %v834_v6 = vmax.f32 %v782_v1, 0.0  ;;  %v698_v7 = vadd.f32 %v1148_v2, %v609_v63 }
 0x110   :  { %v1150_v8 = vpop.f32.mrf.mxu1  ;;  %v1220_v9 = vpop.f32.mrf.mxu0 }
 0x111   :  { %v1028_v12 = vpack.c.bf16 %v834_v6, %v833_v5  ;;  %v1151_v14 = vadd.f32 %v1150_v8, %v1149_v3  ;;  %v787_v20 = vadd.f32 %v786_v58, %v698_v7  ;;  %v625_v58 = vadd.f32 %v1102_v51, %v1652_v43 }
 0x112   :  { %v1152_v16 = vpop.f32.mrf.mxu1  ;;  %v794_v18 = vpop.f32.mrf.mxu0  ;;  %v1108_v3 = vadd.f32 %v1619_v15, %v1617_v13 }
 0x113   :  { %1029 = vst [vmem:[%s1708_s3] sm:$0xff] %v1028_v12   ;;  %v701_v22 = vadd.f32 %v1151_v14, %v612_v10  ;;  %v835_v28 = vmax.f32 %v787_v20, 0.0  ;;  %v1111_v12 = vadd.f32 %v1623_v19, %v1621_v17 }
 0x114   :  { %v1153_v24 = vpop.f32.mrf.mxu1  ;;  %v1223_v26 = vpop.f32.mrf.mxu0  ;;  %v633_v11 = vadd.f32 %v1108_v3, %v1652_v43 }
 0x115   :  { %v790_v42 = vadd.f32 %v789_v4, %v701_v22  ;;  %v1154_v44 = vadd.f32 %v1153_v24, %v1152_v16  ;;  %v628_v4 = vadd.f32 %v1105_v59, %v1652_v43 }
 0x116   :  { %v1155_v45 = vpop.f32.mrf.mxu1  ;;  %v797_v46 = vpop.f32.mrf.mxu0 }
 0x117   :  { %v836_v29 = vmax.f32 %v790_v42, 0.0  ;;  %v706_v47 = vadd.f32 %v1154_v44, %v617_v40  ;;  %v636_v40 = vadd.f32 %v1111_v12, %v1652_v43 }
 0x118   :  { %v1156_v48 = vpop.f32.mrf.mxu1  ;;  %v1224_v49 = vpop.f32.mrf.mxu0 }
 0x119   :  { %v1033_v52 = vpack.c.bf16 %v836_v29, %v835_v28  ;;  %v1157_v53 = vadd.f32 %v1156_v48, %v1155_v45  ;;  %v795_v31 = vadd.f32 %v794_v18, %v706_v47  ;;  %v641_v47 = vadd.f32 %v1114_v41, %v1652_v43 }
 0x11a   :  { %v1158_v54 = vpop.f32.mrf.mxu1  ;;  %v802_v55 = vpop.f32.mrf.mxu0  ;;  %v1117_v48 = vadd.f32 %v1631_v27, %v1629_v25 }
 0x11b   :  { %1060 = vst [vmem:[%s1708_s3 + $0x8] sm:$0xff] %v1033_v52   ;;  %v709_v33 = vadd.f32 %v1157_v53, %v620_v50  ;;  %v837_v62 = vmax.f32 %v795_v31, 0.0 }
 0x11c   :  { %v1159_v56 = vpop.f32.mrf.mxu1  ;;  %v1227_v57 = vpop.f32.mrf.mxu0  ;;  %v644_v31 = vadd.f32 %v1117_v48, %v1652_v43 }
 0x11d   :  { %v798_v60 = vadd.f32 %v797_v46, %v709_v33  ;;  %v1160_v61 = vadd.f32 %v1159_v56, %v1158_v54  ;;  %v1120_v33 = vadd.f32 %v1635_v32, %v1633_v30 }
 0x11e   :  { %v1161_v34 = vpop.f32.mrf.mxu1  ;;  %v805_v36 = vpop.f32.mrf.mxu0 }
 0x11f   :  { %v838_v63 = vmax.f32 %v798_v60, 0.0  ;;  %v714_v0 = vadd.f32 %v1160_v61, %v625_v58 }
 0x120   :  { %v1162_v1 = vpop.f32.mrf.mxu1  ;;  %v1228_v2 = vpop.f32.mrf.mxu0 }
 0x121   :  { %v1038_v5 = vpack.c.bf16 %v838_v63, %v837_v62  ;;  %v1163_v6 = vadd.f32 %v1162_v1, %v1161_v34  ;;  %v803_v37 = vadd.f32 %v802_v55, %v714_v0  ;;  %v649_v34 = vadd.f32 %v1120_v33, %v1652_v43 }
 0x122   :  { %v1164_v7 = vpop.f32.mrf.mxu1  ;;  %v810_v8 = vpop.f32.mrf.mxu0 }
 0x123   :  { %1061 = vst [vmem:[%s1708_s3 + $0x10] sm:$0xff] %v1038_v5   ;;  %v717_v39 = vadd.f32 %v1163_v6, %v628_v4  ;;  %v839_v18 = vmax.f32 %v803_v37, 0.0 }
 0x124   :  { %v1165_v9 = vpop.f32.mrf.mxu1  ;;  %v1231_v10 = vpop.f32.mrf.mxu0 }
 0x125   :  { %v806_v13 = vadd.f32 %v805_v36, %v717_v39  ;;  %v1166_v15 = vadd.f32 %v1165_v9, %v1164_v7  ;;  %v1123_v36 = vadd.f32 %v1645_v38, %v1639_v35 }
 0x126   :  { %v1167_v14 = vpop.f32.mrf.mxu1  ;;  %v813_v16 = vpop.f32.mrf.mxu0 }
 0x127   :  { %v840_v20 = vmax.f32 %v806_v13, 0.0  ;;  %v722_v22 = vadd.f32 %v1166_v15, %v633_v11  ;;  %v652_v5 = vadd.f32 %v1123_v36, %v1652_v43 }
 0x128   :  { %v1168_v24 = vpop.f32.mrf.mxu1  ;;  %v1232_v26 = vpop.f32.mrf.mxu0 }
 0x129   :  { %v1043_v42 = vpack.c.bf16 %v840_v20, %v839_v18  ;;  %v1169_v44 = vadd.f32 %v1168_v24, %v1167_v14  ;;  %v811_v17 = vadd.f32 %v810_v8, %v722_v22 }
 0x12a   :  { %v1170_v45 = vpop.f32.mrf.mxu1  ;;  %v818_v46 = vpop.f32.mrf.mxu0 }
 0x12b   :  { %1062 = vst [vmem:[%s1708_s3 + $0x18] sm:$0xff] %v1043_v42   ;;  %v725_v19 = vadd.f32 %v1169_v44, %v636_v40  ;;  %v841_v51 = vmax.f32 %v811_v17, 0.0 }
 0x12c   :  { %v1171_v28 = vpop.f32.mrf.mxu1  ;;  %v1235_v29 = vpop.f32.mrf.mxu0 }
 0x12d   :  { %v814_v49 = vadd.f32 %v813_v16, %v725_v19  ;;  %v1172_v50 = vadd.f32 %v1171_v28, %v1170_v45 }
 0x12e   :  { %v1173_v21 = vpop.f32.mrf.mxu1  ;;  %v821_v23 = vpop.f32.mrf.mxu0 }
 0x12f   :  { %v842_v52 = vmax.f32 %v814_v49, 0.0  ;;  %v730_v53 = vadd.f32 %v1172_v50, %v641_v47 }
 0x130   :  { %v1174_v54 = vpop.f32.mrf.mxu1  ;;  %v1236_v55 = vpop.f32.mrf.mxu0 }
 0x131   :  { %v1048_v56 = vpack.c.bf16 %v842_v52, %v841_v51  ;;  %v1175_v57 = vadd.f32 %v1174_v54, %v1173_v21  ;;  %v819_v25 = vadd.f32 %v818_v46, %v730_v53 }
 0x132   :  { %v1176_v58 = vpop.f32.mrf.mxu1  ;;  %v826_v59 = vpop.f32.mrf.mxu0 }
 0x133   :  { %1063 = vst [vmem:[%s1708_s3 + $0x20] sm:$0xff] %v1048_v56   ;;  %v733_v27 = vadd.f32 %v1175_v57, %v644_v31  ;;  %v843_v0 = vmax.f32 %v819_v25, 0.0 }
 0x134   :  { %v1177_v60 = vpop.f32.mrf.mxu1  ;;  %v1239_v61 = vpop.f32.mrf.mxu0 }
 0x135   :  { %v822_v62 = vadd.f32 %v821_v23, %v733_v27  ;;  %v1178_v63 = vadd.f32 %v1177_v60, %v1176_v58 }
 0x136   :  { %v1179_v30 = vpop.f32.mrf.mxu1  ;;  %v829_v32 = vpop.f32.mrf.mxu0 }
 0x137   :  { %v844_v1 = vmax.f32 %v822_v62, 0.0  ;;  %v738_v2 = vadd.f32 %v1178_v63, %v649_v34 }
 0x138   :  { %v1180_v3 = vpop.f32.mrf.mxu1  ;;  %v1240_v4 = vpop.f32.mrf.mxu0 }
 0x139   :  { %v1053_v6 = vpack.c.bf16 %v844_v1, %v843_v0  ;;  %v1181_v7 = vadd.f32 %v1180_v3, %v1179_v30  ;;  %v827_v8 = vadd.f32 %v826_v59, %v738_v2 }
 0x13b   :  { %1064 = vst [vmem:[%s1708_s3 + $0x28] sm:$0xff] %v1053_v6   ;;  %v741_v37 = vadd.f32 %v1181_v7, %v652_v5  ;;  %v845_v38 = vmax.f32 %v827_v8, 0.0 }
 0x13d   :  { %v830_v35 = vadd.f32 %v829_v32, %v741_v37 }
 0x13f   :  { %v846_v39 = vmax.f32 %v830_v35, 0.0 }
 0x141   :  { %v1058_v9 = vpack.c.bf16 %v846_v39, %v845_v38 }
 0x143   :  { %1065 = vst [vmem:[%s1708_s3 + $0x30] sm:$0xff] %v1058_v9  }

// kernel: _lambda_.7
= control target key start
LH: loop header
LB: loop body
LE: loop exit
PB: predicated region body
PF: predicated region fallthrough
CT: control target
= control target key end

     0   :  { %s2741_s18 = smov 0   ;;  %s2743_s19 = smov 0   ;;  %s3103_s0 = inlined_call_operand.vmem [shape: bf16[16,3200], index: 0, kind: input, shape index: {}]   ;;  %s3104_s1 = inlined_call_operand.vmem [shape: bf16[3200,512], index: 1, kind: input, shape index: {}]   ;;  %s3105_s2 = inlined_call_operand.vmem [shape: f32[1,512], index: 2, kind: input, shape index: {}]   ;;  %s3106_s3 = inlined_call_operand.vmem [shape: bf16[512,128], index: 3, kind: input, shape index: {}]   ;;  %s3107_s4 = inlined_call_operand.vmem [shape: f32[1,128], index: 4, kind: input, shape index: {}]   ;;  %s3108_s5 = inlined_call_operand.vmem [shape: f32[16,128], index: 5, kind: output, shape index: {}]  }
   0x1   :  { %s2745_s20 = smov 0   ;;  %s2747_s21 = smov 0  }
   0x2   :  { %s2749_s22 = smov 0  }
   0x3 LB: > { %s24_s23 = sadd.s32 1, %s2703_s21  ;;  %p43_p1 = scmp.ne.s32.totalorder %s2695_s19, %s2691_s18  ;;  %s2707_s22 = sphi %s2749_s22, %s15_s22   ;;  %s2703_s21 = sphi %s2747_s21, %s3112_s21   ;;  %s2699_s20 = sphi %s2745_s20, %s3111_s20   ;;  %s2695_s19 = sphi %s2743_s19, %s3110_s19   ;;  %s2691_s18 = sphi %s2741_s18, %s3109_s18  }
   0x4   : > { %p25_p0 = scmp.ge.s32.totalorder %s24_s23, 5  ;;  %p44_p2 = scmp.eq.s32.totalorder %s2707_s22, 0 }
   0x5   : > { %s36_s25 = sadd.s32 1, %s2695_s19  ;;  %p2087_p5 = scmp.ge.s32.totalorder %s2707_s22, 5 }
   0x6   : > { %s3114_s23 = smov (%p25_p0, %s24_s23), 0  ;;  %p45_p3 = por %p44_p2, %p43_p1 }
   0x7   : > { %s32_s24 = ssub.s32 %s2703_s21, %s3114_s23  ;;  %193 = sbr.rel (%p2087_p5) target bundleno = 20 (0x14), region = 28 }
   0x8   : > { %p34_p4 = scmp.eq.s32.totalorder %s32_s24, 0 }
   0xa   : > { %s2776_s26 = scalar_select %p34_p4, %s2695_s19, %s36_s25  }
   0xc   : > { %196 = sbr.rel (!%p45_p3) target bundleno = 20 (0x14), region = 32  ;;  %s198_s27 = sand.u32 (%p45_p3), 1, %s2695_s19  }
   0xd   : > { %s2300_s28 = smul.u32 (%p45_p3), 20, %s2703_s21 }
   0xe   : > { %s2346_s29 = smul.u32 (%p45_p3), 40, %s198_s27 }
   0xf   : > { %s206_s7 = scalar_lea.vmem (%p45_p3), %s3103_s0, %s2300_s28 }
  0x10   : > { %v221_v0 = vld [vmem:[%s206_s7] sm:$0xff] (%p45_p3)  ;;  %v223_v1 = vld [vmem:[%s206_s7 + $0x8] sm:$0xff] (%p45_p3)  ;;  %s200_s8 = scalar_lea.vmem (%p45_p3), [#allocation3], %s2346_s29  ;;  %v2089_v4 = vld [vmem:[%s206_s7 + $0x10] sm:$0xf] (%p45_p3) }
  0x11   : > { %v225_v2 = vld [vmem:[%s206_s7 + $0x64] sm:$0xff]  ;;  %222 = vst [vmem:[%s200_s8] sm:$0xff] %v221_v0  ;;  %224 = vst [vmem:[%s200_s8 + $0x8] sm:$0xff] %v223_v1  ;;  %v227_v3 = vld [vmem:[%s206_s7 + $0x6c] sm:$0xff] }
  0x12   : > { %226 = vst [vmem:[%s200_s8 + $0x14] sm:$0xff] %v225_v2  ;;  %v2091_v5 = vld [vmem:[%s206_s7 + $0x74] sm:$0xf]  ;;  %228 = vst [vmem:[%s200_s8 + $0x1c] sm:$0xff] %v227_v3 }
  0x13   : > { %2090 = vst [vmem:[%s200_s8 + $0x10] sm:$0xf] %v2089_v4  ;;  %2092 = vst [vmem:[%s200_s8 + $0x24] sm:$0xf] %v2091_v5 }
  0x14 PF: > { %p2093_p6 = scmp.ge.s32.totalorder %s2707_s22, 1  ;;  %p255_p7 = scmp.lt.s32.totalorder %s2707_s22, 6 }
  0x16   : > { %p256_p8 = pnand %p2093_p6, %p255_p7 }
  0x17   : > { %s262_s9 = sand.u32 (!%p256_p8), 1, %s2691_s18   ;;  %s297_s10 = smul.u32 (!%p256_p8), 80, %s2699_s20 }
  0x18   : > { %259 = sbr.rel (%p256_p8) target bundleno = 646 (0x286), region = 62  ;;  %p2096_p10 = scmp.ne.s32.totalorder (!%p256_p8), %s2699_s20, 0 }
  0x19   : > { %s2347_s11 = smul.u32 (!%p256_p8), 40, %s262_s9  ;;  %p298_p9 = scmp.lt.s32.totalorder (!%p256_p8), %s297_s10, 399 }
  0x1b   : > { %s2793_s16 = scalar_lea.vmem (!%p256_p8), [#allocation3], %s2347_s11 }
  0x1d   : > { %s3116_s10 = smov (!%p298_p9, %s297_s10), 399  ;;  %314 = sbr.rel (%p2096_p10) target bundleno = 39 (0x27), region = 70 }
  0x1e   : > { %s2301_s12 = sshll.u32 %s3116_s10, 4 }
  0x1f   : > { %s2791_s15 = scalar_lea.vmem %s3104_s1, %s2301_s12 }
  0x22   : > { %v2709_v6 = vmov 0.0  }
  0x23   : > { %315 = vst [vmem:[#allocation2 + $0x30] sm:$0xff] %v2709_v6  ;;  %316 = vst [vmem:[#allocation2] sm:$0xff] %v2709_v6 }
  0x24   : > { %317 = vst [vmem:[#allocation2 + $0x18] sm:$0xff] %v2709_v6  ;;  %318 = vst [vmem:[#allocation2 + $0x10] sm:$0xff] %v2709_v6 }
  0x25   : > { %319 = vst [vmem:[#allocation2 + $0x8] sm:$0xff] %v2709_v6  ;;  %320 = vst [vmem:[#allocation2 + $0x20] sm:$0xff] %v2709_v6 }
  0x26   : > { %321 = vst [vmem:[#allocation2 + $0x28] sm:$0xff] %v2709_v6  ;;  %322 = vst [vmem:[#allocation2 + $0x38] sm:$0xff] %v2709_v6 }
  0x27 PF: > { %v2390_v7 = vld [vmem:[%s2791_s15 + $0xe4] ss:$16 sps:$4 sm:$0xff]   ;;  %v2394_v9 = vld [vmem:[%s2791_s15 + $0xe0] ss:$16 sps:$4 sm:$0xff]   ;;  %p2262_p11 = scmp.ne.s32.totalorder %s2699_s20, 4 }
  0x28   : > { %v2392_v8 = vld [vmem:[%s2791_s15 + $0x2e4] ss:$16 sps:$4 sm:$0xff]   ;;  %1323 = vmatprep.subr.bf16.mxu0 %v2390_v7  ;;  %v2395_v10 = vld [vmem:[%s2791_s15 + $0x2e0] ss:$16 sps:$4 sm:$0xff]  }
  0x29   : > { %1366 = vmatprep.subr.bf16.mxu1 %v2392_v8  ;;  %v2396_v11 = vld [vmem:[%s2791_s15 + $0xc4] ss:$16 sps:$4 sm:$0xff]   ;;  %1324 = vmatpush1.bf16.msra.mxu0 %v2394_v9  ;;  %v2400_v13 = vld [vmem:[%s2791_s15 + $0xc0] ss:$16 sps:$4 sm:$0xff]  }
  0x2a   : > { %1367 = vmatpush1.bf16.msra.mxu1 %v2395_v10  ;;  %v2398_v12 = vld [vmem:[%s2791_s15 + $0x2c4] ss:$16 sps:$4 sm:$0xff]   ;;  %1325 = vmatprep.subr.bf16.mxu0 %v2396_v11  ;;  %v2401_v14 = vld [vmem:[%s2791_s15 + $0x2c0] ss:$16 sps:$4 sm:$0xff]   ;;  %v2497_v10 = vld [vmem:[%s2791_s15 + $0xec] ss:$16 sps:$4 sm:$0xff]  }
  0x2b   : > { %1368 = vmatprep.subr.bf16.mxu1 %v2398_v12  ;;  %v2402_v15 = vld [vmem:[%s2791_s15 + $0xa4] ss:$16 sps:$4 sm:$0xff]   ;;  %v2406_v17 = vld [vmem:[%s2791_s15 + $0xa0] ss:$16 sps:$4 sm:$0xff]  }
  0x2c   : > { %v2404_v16 = vld [vmem:[%s2791_s15 + $0x2a4] ss:$16 sps:$4 sm:$0xff]   ;;  %v2407_v18 = vld [vmem:[%s2791_s15 + $0x2a0] ss:$16 sps:$4 sm:$0xff]  }
  0x2d   : > { %1326 = vmatpush1.bf16.msra.mxu0 %v2400_v13  ;;  %v2408_v19 = vld [vmem:[%s2791_s15 + $0x84] ss:$16 sps:$4 sm:$0xff]   ;;  %v2412_v21 = vld [vmem:[%s2791_s15 + $0x80] ss:$16 sps:$4 sm:$0xff]  }
  0x2e   : > { %1369 = vmatpush1.bf16.msra.mxu1 %v2401_v14  ;;  %1327 = vmatprep.subr.bf16.mxu0 %v2402_v15  ;;  %v2410_v20 = vld [vmem:[%s2791_s15 + $0x284] ss:$16 sps:$4 sm:$0xff]   ;;  %v2413_v22 = vld [vmem:[%s2791_s15 + $0x280] ss:$16 sps:$4 sm:$0xff]   ;;  %v2495_v14 = vld [vmem:[%s2791_s15 + $0xe8] ss:$16 sps:$4 sm:$0xff]  }
  0x2f   : > { %1370 = vmatprep.subr.bf16.mxu1 %v2404_v16  ;;  %v2414_v23 = vld [vmem:[%s2791_s15 + $0x64] ss:$16 sps:$4 sm:$0xff]   ;;  %v2418_v25 = vld [vmem:[%s2791_s15 + $0x60] ss:$16 sps:$4 sm:$0xff]   ;;  %v2503_v16 = vld [vmem:[%s2791_s15 + $0xcc] ss:$16 sps:$4 sm:$0xff]  }
  0x30   : > { %v2416_v24 = vld [vmem:[%s2791_s15 + $0x264] ss:$16 sps:$4 sm:$0xff]   ;;  %v2419_v26 = vld [vmem:[%s2791_s15 + $0x260] ss:$16 sps:$4 sm:$0xff]  }
  0x31   : > { %1328 = vmatpush1.bf16.msra.mxu0 %v2406_v17  ;;  %v2420_v27 = vld [vmem:[%s2791_s15 + $0x44] ss:$16 sps:$4 sm:$0xff]   ;;  %v2424_v29 = vld [vmem:[%s2791_s15 + $0x40] ss:$16 sps:$4 sm:$0xff]  }
  0x32   : > { %1371 = vmatpush1.bf16.msra.mxu1 %v2407_v18  ;;  %1329 = vmatprep.subr.bf16.mxu0 %v2408_v19  ;;  %v2422_v28 = vld [vmem:[%s2791_s15 + $0x244] ss:$16 sps:$4 sm:$0xff]   ;;  %v2425_v30 = vld [vmem:[%s2791_s15 + $0x240] ss:$16 sps:$4 sm:$0xff]   ;;  %v2501_v18 = vld [vmem:[%s2791_s15 + $0xc8] ss:$16 sps:$4 sm:$0xff]  }
  0x33   : > { %1372 = vmatprep.subr.bf16.mxu1 %v2410_v20  ;;  %v2426_v31 = vld [vmem:[%s2791_s15 + $0x24] ss:$16 sps:$4 sm:$0xff]   ;;  %v2430_v33 = vld [vmem:[%s2791_s15 + $0x20] ss:$16 sps:$4 sm:$0xff]   ;;  %v2509_v20 = vld [vmem:[%s2791_s15 + $0xac] ss:$16 sps:$4 sm:$0xff]  }
  0x34   : > { %v2428_v32 = vld [vmem:[%s2791_s15 + $0x224] ss:$16 sps:$4 sm:$0xff]   ;;  %v2431_v34 = vld [vmem:[%s2791_s15 + $0x220] ss:$16 sps:$4 sm:$0xff]  }
  0x35   : > { %1330 = vmatpush1.bf16.msra.mxu0 %v2412_v21  ;;  %v2432_v35 = vld [vmem:[%s2791_s15 + $0x4] ss:$16 sps:$4 sm:$0xff]   ;;  %v2436_v37 = vld [vmem:[%s2791_s15] ss:$16 sps:$4 sm:$0xff]   ;;  %v2710_v21 = vmov 0  }
  0x36   : > { %1373 = vmatpush1.bf16.msra.mxu1 %v2413_v22  ;;  %1331 = vmatprep.subr.bf16.mxu0 %v2414_v23  ;;  %v2434_v36 = vld [vmem:[%s2791_s15 + $0x204] ss:$16 sps:$4 sm:$0xff]   ;;  %v2437_v38 = vld [vmem:[%s2791_s15 + $0x200] ss:$16 sps:$4 sm:$0xff]   ;;  %v2507_v23 = vld [vmem:[%s2791_s15 + $0xa8] ss:$16 sps:$4 sm:$0xff]  }
  0x37   : > { %1374 = vmatprep.subr.bf16.mxu1 %v2416_v24  ;;  %v2438_v39 = vld [vmem:[%s2791_s15 + $0x1e4] ss:$16 sps:$4 sm:$0xff]   ;;  %v2442_v41 = vld [vmem:[%s2791_s15 + $0x1e0] ss:$16 sps:$4 sm:$0xff]  }
  0x38   : > { %v2440_v40 = vld [vmem:[%s2791_s15 + $0x3e4] ss:$16 sps:$4 sm:$0xff]   ;;  %v2443_v42 = vld [vmem:[%s2791_s15 + $0x3e0] ss:$16 sps:$4 sm:$0xff]  }
  0x39   : > { %1332 = vmatpush1.bf16.msra.mxu0 %v2418_v25  ;;  %v2444_v43 = vld [vmem:[%s2791_s15 + $0x1c4] ss:$16 sps:$4 sm:$0xff]   ;;  %v2448_v45 = vld [vmem:[%s2791_s15 + $0x1c0] ss:$16 sps:$4 sm:$0xff]   ;;  %v2515_v25 = vld [vmem:[%s2791_s15 + $0x8c] ss:$16 sps:$4 sm:$0xff]  }
  0x3a   : > { %1375 = vmatpush1.bf16.msra.mxu1 %v2419_v26  ;;  %1333 = vmatprep.subr.bf16.mxu0 %v2420_v27  ;;  %v2446_v44 = vld [vmem:[%s2791_s15 + $0x3c4] ss:$16 sps:$4 sm:$0xff]   ;;  %v2449_v46 = vld [vmem:[%s2791_s15 + $0x3c0] ss:$16 sps:$4 sm:$0xff]   ;;  %v2513_v27 = vld [vmem:[%s2791_s15 + $0x88] ss:$16 sps:$4 sm:$0xff]  }
  0x3b   : > { %1376 = vmatprep.subr.bf16.mxu1 %v2422_v28  ;;  %v2450_v47 = vld [vmem:[%s2791_s15 + $0x1a4] ss:$16 sps:$4 sm:$0xff]   ;;  %v2454_v49 = vld [vmem:[%s2791_s15 + $0x1a0] ss:$16 sps:$4 sm:$0xff]  }
  0x3c   : > { %v2452_v48 = vld [vmem:[%s2791_s15 + $0x3a4] ss:$16 sps:$4 sm:$0xff]   ;;  %v2455_v50 = vld [vmem:[%s2791_s15 + $0x3a0] ss:$16 sps:$4 sm:$0xff]  }
  0x3d   : > { %1334 = vmatpush1.bf16.msra.mxu0 %v2424_v29  ;;  %v2456_v51 = vld [vmem:[%s2791_s15 + $0x184] ss:$16 sps:$4 sm:$0xff]   ;;  %v2460_v53 = vld [vmem:[%s2791_s15 + $0x180] ss:$16 sps:$4 sm:$0xff]   ;;  %v2521_v29 = vld [vmem:[%s2791_s15 + $0x6c] ss:$16 sps:$4 sm:$0xff]  }
  0x3e   : > { %1377 = vmatpush1.bf16.msra.mxu1 %v2425_v30  ;;  %1335 = vmatprep.subr.bf16.mxu0 %v2426_v31  ;;  %v2458_v52 = vld [vmem:[%s2791_s15 + $0x384] ss:$16 sps:$4 sm:$0xff]   ;;  %v2461_v54 = vld [vmem:[%s2791_s15 + $0x380] ss:$16 sps:$4 sm:$0xff]   ;;  %v2519_v31 = vld [vmem:[%s2791_s15 + $0x68] ss:$16 sps:$4 sm:$0xff]  }
  0x3f   : > { %1378 = vmatprep.subr.bf16.mxu1 %v2428_v32  ;;  %v2462_v55 = vld [vmem:[%s2791_s15 + $0x164] ss:$16 sps:$4 sm:$0xff]   ;;  %v2466_v59 = vld [vmem:[%s2791_s15 + $0x160] ss:$16 sps:$4 sm:$0xff]  }
  0x40   : > { %v2488_v56 = vld [vmem:[%s2793_s16 + $0x4] ss:$20 sps:$4 sm:$0xff]   ;;  %v2848_v58 = vld [vmem:[%s2793_s16 + $0xc] ss:$20 sps:$4 sm:$0xff]   ;;  %v2871_v12 = vld [vmem:[%s2793_s16 + $0x8] ss:$20 sps:$4 sm:$0xff]  }
  0x41   : > { %1336 = vmatpush1.bf16.msra.mxu0 %v2430_v33  ;;  %v2464_v57 = vld [vmem:[%s2791_s15 + $0x364] ss:$16 sps:$4 sm:$0xff]   ;;  %1355 = vmatprep.mubr.bf16.mxu0 %v2488_v56  ;;  %v2467_v60 = vld [vmem:[%s2791_s15 + $0x360] ss:$16 sps:$4 sm:$0xff]   ;;  %v2527_v33 = vld [vmem:[%s2791_s15 + $0x4c] ss:$16 sps:$4 sm:$0xff]  }
  0x42   : > { %1379 = vmatpush1.bf16.msra.mxu1 %v2431_v34  ;;  %1337 = vmatprep.subr.bf16.mxu0 %v2432_v35  ;;  %v2468_v61 = vld [vmem:[%s2791_s15 + $0x144] ss:$16 sps:$4 sm:$0xff]   ;;  %v2472_v63 = vld [vmem:[%s2791_s15 + $0x140] ss:$16 sps:$4 sm:$0xff]   ;;  %v2525_v35 = vld [vmem:[%s2791_s15 + $0x48] ss:$16 sps:$4 sm:$0xff]  }
  0x43   : > { %1380 = vmatprep.subr.bf16.mxu1 %v2434_v36  ;;  %1398 = vmatprep.mubr.bf16.mxu1 %v2848_v58  ;;  %v2470_v62 = vld [vmem:[%s2791_s15 + $0x344] ss:$16 sps:$4 sm:$0xff]   ;;  %v2473_v0 = vld [vmem:[%s2791_s15 + $0x340] ss:$16 sps:$4 sm:$0xff]  }
  0x44   : > { %v2474_v1 = vld [vmem:[%s2791_s15 + $0x124] ss:$16 sps:$4 sm:$0xff]   ;;  %v2478_v3 = vld [vmem:[%s2791_s15 + $0x120] ss:$16 sps:$4 sm:$0xff]  }
  0x45   : > { %1338 = vmatpush1.bf16.msra.mxu0 %v2436_v37  ;;  %v2476_v2 = vld [vmem:[%s2791_s15 + $0x324] ss:$16 sps:$4 sm:$0xff]   ;;  %v2479_v4 = vld [vmem:[%s2791_s15 + $0x320] ss:$16 sps:$4 sm:$0xff]   ;;  %v2533_v37 = vld [vmem:[%s2791_s15 + $0x2c] ss:$16 sps:$4 sm:$0xff]  }
  0x46   : > { %1381 = vmatpush1.bf16.msra.mxu1 %v2437_v38  ;;  %1339 = vmatprep.subr.bf16.mxu0 %v2438_v39  ;;  %v2480_v5 = vld [vmem:[%s2791_s15 + $0x104] ss:$16 sps:$4 sm:$0xff]   ;;  %v2484_v7 = vld [vmem:[%s2791_s15 + $0x100] ss:$16 sps:$4 sm:$0xff]   ;;  %v2531_v39 = vld [vmem:[%s2791_s15 + $0x28] ss:$16 sps:$4 sm:$0xff]  }
  0x47   : > { %1382 = vmatprep.subr.bf16.mxu1 %v2440_v40  ;;  %v2482_v6 = vld [vmem:[%s2791_s15 + $0x304] ss:$16 sps:$4 sm:$0xff]   ;;  %v2485_v8 = vld [vmem:[%s2791_s15 + $0x300] ss:$16 sps:$4 sm:$0xff]  }
  0x48   : > { %v2494_v9 = vld [vmem:[%s2791_s15 + $0x4e4] ss:$16 sps:$4 sm:$0xff]   ;;  %v2492_v13 = vld [vmem:[%s2791_s15 + $0x4e0] ss:$16 sps:$4 sm:$0xff]  }
  0x49   : > { %1340 = vmatpush2.bf16.msra.mxu0 %v2442_v41  ;;  %v2868_v11 = vld [vmem:[%s2793_s16] ss:$20 sps:$4 sm:$0xff]  }
  0x4a   : > { %1383 = vmatpush2.bf16.msra.mxu1 %v2443_v42  ;;  %1341 = vmatprep.subr.bf16.mxu0 %v2444_v43  ;;  %v2500_v15 = vld [vmem:[%s2791_s15 + $0x4c4] ss:$16 sps:$4 sm:$0xff]   ;;  %v2498_v17 = vld [vmem:[%s2791_s15 + $0x4c0] ss:$16 sps:$4 sm:$0xff]   ;;  %v2539_v41 = vld [vmem:[%s2791_s15 + $0xc] ss:$16 sps:$4 sm:$0xff]  }
  0x4b   : > { %1384 = vmatprep.subr.bf16.mxu1 %v2446_v44  ;;  %v2506_v19 = vld [vmem:[%s2791_s15 + $0x4a4] ss:$16 sps:$4 sm:$0xff]   ;;  %v2504_v22 = vld [vmem:[%s2791_s15 + $0x4a0] ss:$16 sps:$4 sm:$0xff]   ;;  %v2537_v43 = vld [vmem:[%s2791_s15 + $0x8] ss:$16 sps:$4 sm:$0xff]  }
  0x4c   : > { %v2512_v24 = vld [vmem:[%s2791_s15 + $0x484] ss:$16 sps:$4 sm:$0xff]   ;;  %v2510_v26 = vld [vmem:[%s2791_s15 + $0x480] ss:$16 sps:$4 sm:$0xff]   ;;  %v2543_v44 = vld [vmem:[%s2791_s15 + $0x1ec] ss:$16 sps:$4 sm:$0xff]  }
  0x4d   : > { %1342 = vmatpush2.bf16.msra.mxu0 %v2448_v45  ;;  %v2518_v28 = vld [vmem:[%s2791_s15 + $0x464] ss:$16 sps:$4 sm:$0xff]   ;;  %v2516_v30 = vld [vmem:[%s2791_s15 + $0x460] ss:$16 sps:$4 sm:$0xff]   ;;  %v2546_v45 = vld [vmem:[%s2791_s15 + $0x2ec] ss:$16 sps:$4 sm:$0xff]  }
  0x4e   : > { %1385 = vmatpush2.bf16.msra.mxu1 %v2449_v46  ;;  %1343 = vmatprep.subr.bf16.mxu0 %v2450_v47  ;;  %v2524_v32 = vld [vmem:[%s2791_s15 + $0x444] ss:$16 sps:$4 sm:$0xff]   ;;  %v2522_v34 = vld [vmem:[%s2791_s15 + $0x440] ss:$16 sps:$4 sm:$0xff]   ;;  %v2541_v47 = vld [vmem:[%s2791_s15 + $0x1e8] ss:$16 sps:$4 sm:$0xff]  }
  0x4f   : > { %1386 = vmatprep.subr.bf16.mxu1 %v2452_v48  ;;  %v2530_v36 = vld [vmem:[%s2791_s15 + $0x424] ss:$16 sps:$4 sm:$0xff]   ;;  %v2528_v38 = vld [vmem:[%s2791_s15 + $0x420] ss:$16 sps:$4 sm:$0xff]   ;;  %v2544_v48 = vld [vmem:[%s2791_s15 + $0x2e8] ss:$16 sps:$4 sm:$0xff]  }
  0x50   : > { %v2536_v40 = vld [vmem:[%s2791_s15 + $0x404] ss:$16 sps:$4 sm:$0xff]   ;;  %v2534_v42 = vld [vmem:[%s2791_s15 + $0x400] ss:$16 sps:$4 sm:$0xff]  }
  0x51   : > { %1344 = vmatpush2.bf16.msra.mxu0 %v2454_v49  ;;  %v2909_v46 = vld [vmem:[%s2793_s16 + $0x10] ss:$20 sps:$4 sm:$0xff]  }
  0x52   : > { %1387 = vmatpush2.bf16.msra.mxu1 %v2455_v50  ;;  %1345 = vmatprep.subr.bf16.mxu0 %v2456_v51  ;;  %v2549_v49 = vld [vmem:[%s2791_s15 + $0x1cc] ss:$16 sps:$4 sm:$0xff]   ;;  %v2547_v51 = vld [vmem:[%s2791_s15 + $0x1c8] ss:$16 sps:$4 sm:$0xff]  }
  0x53   : > { %1388 = vmatprep.subr.bf16.mxu1 %v2458_v52  ;;  %v2552_v50 = vld [vmem:[%s2791_s15 + $0x2cc] ss:$16 sps:$4 sm:$0xff]   ;;  %v2550_v52 = vld [vmem:[%s2791_s15 + $0x2c8] ss:$16 sps:$4 sm:$0xff]  }
  0x55   : > { %1346 = vmatpush2.bf16.msra.mxu0 %v2460_v53  ;;  %v2555_v53 = vld [vmem:[%s2791_s15 + $0x1ac] ss:$16 sps:$4 sm:$0xff]  }
  0x56   : > { %1389 = vmatpush2.bf16.msra.mxu1 %v2461_v54  ;;  %1347 = vmatprep.subr.bf16.mxu0 %v2462_v55  ;;  %v2558_v54 = vld [vmem:[%s2791_s15 + $0x2ac] ss:$16 sps:$4 sm:$0xff]   ;;  %v2553_v55 = vld [vmem:[%s2791_s15 + $0x1a8] ss:$16 sps:$4 sm:$0xff]  }
  0x57   : > { %1390 = vmatprep.subr.bf16.mxu1 %v2464_v57  ;;  %v2561_v57 = vld [vmem:[%s2791_s15 + $0x18c] ss:$16 sps:$4 sm:$0xff]  }
  0x59   : > { %1348 = vmatpush2.bf16.msra.mxu0 %v2466_v59  ;;  %v2564_v59 = vld [vmem:[%s2791_s15 + $0x28c] ss:$16 sps:$4 sm:$0xff]  }
  0x5a   : > { %1391 = vmatpush2.bf16.msra.mxu1 %v2467_v60  ;;  %1349 = vmatprep.subr.bf16.mxu0 %v2468_v61  ;;  %v2559_v60 = vld [vmem:[%s2791_s15 + $0x188] ss:$16 sps:$4 sm:$0xff]  }
  0x5b   : > { %1392 = vmatprep.subr.bf16.mxu1 %v2470_v62  ;;  %v2562_v61 = vld [vmem:[%s2791_s15 + $0x288] ss:$16 sps:$4 sm:$0xff]   ;;  %v2570_v62 = vld [vmem:[%s2791_s15 + $0x26c] ss:$16 sps:$4 sm:$0xff]  }
  0x5d   : > { %1350 = vmatpush2.bf16.msra.mxu0 %v2472_v63  ;;  %v2565_v63 = vld [vmem:[%s2791_s15 + $0x168] ss:$16 sps:$4 sm:$0xff]  }
  0x5e   : > { %1393 = vmatpush2.bf16.msra.mxu1 %v2473_v0  ;;  %1351 = vmatprep.subr.bf16.mxu0 %v2474_v1  ;;  %v2568_v0 = vld [vmem:[%s2791_s15 + $0x268] ss:$16 sps:$4 sm:$0xff]   ;;  %v2573_v1 = vld [vmem:[%s2791_s15 + $0x14c] ss:$16 sps:$4 sm:$0xff]  }
  0x5f   : > { %1394 = vmatprep.subr.bf16.mxu1 %v2476_v2  ;;  %v2576_v2 = vld [vmem:[%s2791_s15 + $0x24c] ss:$16 sps:$4 sm:$0xff]  }
  0x61   : > { %1352 = vmatpush2.bf16.msra.mxu0 %v2478_v3  ;;  %v2571_v3 = vld [vmem:[%s2791_s15 + $0x148] ss:$16 sps:$4 sm:$0xff]  }
  0x62   : > { %1395 = vmatpush2.bf16.msra.mxu1 %v2479_v4  ;;  %1353 = vmatprep.subr.bf16.mxu0 %v2480_v5  ;;  %v2574_v4 = vld [vmem:[%s2791_s15 + $0x248] ss:$16 sps:$4 sm:$0xff]   ;;  %v2579_v5 = vld [vmem:[%s2791_s15 + $0x12c] ss:$16 sps:$4 sm:$0xff]  }
  0x63   : > { %1396 = vmatprep.subr.bf16.mxu1 %v2482_v6  ;;  %v2582_v6 = vld [vmem:[%s2791_s15 + $0x22c] ss:$16 sps:$4 sm:$0xff]  }
  0x65   : > { %1354 = vmatpush2.bf16.msra.mxu0 %v2484_v7  ;;  %v2577_v7 = vld [vmem:[%s2791_s15 + $0x128] ss:$16 sps:$4 sm:$0xff]  }
  0x66   : > { %1397 = vmatpush2.bf16.msra.mxu1 %v2485_v8  ;;  %1409 = vmatprep.subr.bf16.mxu0 %v2494_v9  ;;  %v2580_v8 = vld [vmem:[%s2791_s15 + $0x228] ss:$16 sps:$4 sm:$0xff]   ;;  %v2585_v9 = vld [vmem:[%s2791_s15 + $0x10c] ss:$16 sps:$4 sm:$0xff]  }
  0x67   : > { %1452 = vmatprep.subr.bf16.mxu1 %v2497_v10  ;;  %v2588_v10 = vld [vmem:[%s2791_s15 + $0x20c] ss:$16 sps:$4 sm:$0xff]  }
  0x68   : > { %1356 = vmatmul.mubr.bf16.vlgmr.msra.gmra.mxu0 %v2868_v11 }
  0x69   : > { %1399 = vmatmul.mubr.bf16.vlgmr.msra.gmra.mxu1 %v2871_v12  ;;  %1410 = vmatpush1.bf16.msra.mxu0 %v2492_v13  ;;  %v2583_v13 = vld [vmem:[%s2791_s15 + $0x108] ss:$16 sps:$4 sm:$0xff]  }
  0x6a   : > { %1453 = vmatpush1.bf16.msra.mxu1 %v2495_v14  ;;  %1411 = vmatprep.subr.bf16.mxu0 %v2500_v15  ;;  %v2586_v14 = vld [vmem:[%s2791_s15 + $0x208] ss:$16 sps:$4 sm:$0xff]   ;;  %v2591_v15 = vld [vmem:[%s2791_s15 + $0x3ec] ss:$16 sps:$4 sm:$0xff]  }
  0x6b   : > { %1454 = vmatprep.subr.bf16.mxu1 %v2503_v16  ;;  %1441 = vmatprep.mubr.bf16.mxu0 %v2710_v21  ;;  %v2594_v16 = vld [vmem:[%s2791_s15 + $0x4ec] ss:$16 sps:$4 sm:$0xff]  }
  0x6c   : > { %1484 = vmatprep.mubr.bf16.mxu1 %v2488_v56  ;;  %v2556_v56 = vld [vmem:[%s2791_s15 + $0x2a8] ss:$16 sps:$4 sm:$0xff]  }
  0x6d   : > { %1412 = vmatpush1.bf16.msra.mxu0 %v2498_v17  ;;  %v2589_v17 = vld [vmem:[%s2791_s15 + $0x3e8] ss:$16 sps:$4 sm:$0xff]  }
  0x6e   : > { %1455 = vmatpush1.bf16.msra.mxu1 %v2501_v18  ;;  %1413 = vmatprep.subr.bf16.mxu0 %v2506_v19  ;;  %v2592_v18 = vld [vmem:[%s2791_s15 + $0x4e8] ss:$16 sps:$4 sm:$0xff]   ;;  %v2597_v19 = vld [vmem:[%s2791_s15 + $0x3cc] ss:$16 sps:$4 sm:$0xff]  }
  0x6f   : > { %1456 = vmatprep.subr.bf16.mxu1 %v2509_v20  ;;  %v2600_v20 = vld [vmem:[%s2791_s15 + $0x4cc] ss:$16 sps:$4 sm:$0xff]  }
  0x71   : > { %1414 = vmatpush1.bf16.msra.mxu0 %v2504_v22  ;;  %v2595_v22 = vld [vmem:[%s2791_s15 + $0x3c8] ss:$16 sps:$4 sm:$0xff]  }
  0x72   : > { %1457 = vmatpush1.bf16.msra.mxu1 %v2507_v23  ;;  %1415 = vmatprep.subr.bf16.mxu0 %v2512_v24  ;;  %v2598_v23 = vld [vmem:[%s2791_s15 + $0x4c8] ss:$16 sps:$4 sm:$0xff]   ;;  %v2603_v24 = vld [vmem:[%s2791_s15 + $0x3ac] ss:$16 sps:$4 sm:$0xff]  }
  0x73   : > { %1458 = vmatprep.subr.bf16.mxu1 %v2515_v25  ;;  %v2606_v25 = vld [vmem:[%s2791_s15 + $0x4ac] ss:$16 sps:$4 sm:$0xff]  }
  0x75   : > { %1416 = vmatpush1.bf16.msra.mxu0 %v2510_v26  ;;  %v2601_v26 = vld [vmem:[%s2791_s15 + $0x3a8] ss:$16 sps:$4 sm:$0xff]  }
  0x76   : > { %1459 = vmatpush1.bf16.msra.mxu1 %v2513_v27  ;;  %1417 = vmatprep.subr.bf16.mxu0 %v2518_v28  ;;  %v2609_v27 = vld [vmem:[%s2791_s15 + $0x38c] ss:$16 sps:$4 sm:$0xff]  }
  0x77   : > { %1460 = vmatprep.subr.bf16.mxu1 %v2521_v29  ;;  %v2612_v28 = vld [vmem:[%s2791_s15 + $0x48c] ss:$16 sps:$4 sm:$0xff]   ;;  %v2607_v29 = vld [vmem:[%s2791_s15 + $0x388] ss:$16 sps:$4 sm:$0xff]  }
  0x79   : > { %1418 = vmatpush1.bf16.msra.mxu0 %v2516_v30  ;;  %v2610_v30 = vld [vmem:[%s2791_s15 + $0x488] ss:$16 sps:$4 sm:$0xff]  }
  0x7a   : > { %1461 = vmatpush1.bf16.msra.mxu1 %v2519_v31  ;;  %1419 = vmatprep.subr.bf16.mxu0 %v2524_v32  ;;  %v2618_v31 = vld [vmem:[%s2791_s15 + $0x46c] ss:$16 sps:$4 sm:$0xff]   ;;  %v2613_v32 = vld [vmem:[%s2791_s15 + $0x368] ss:$16 sps:$4 sm:$0xff]  }
  0x7b   : > { %1462 = vmatprep.subr.bf16.mxu1 %v2527_v33  ;;  %v2616_v33 = vld [vmem:[%s2791_s15 + $0x468] ss:$16 sps:$4 sm:$0xff]  }
  0x7d   : > { %1420 = vmatpush1.bf16.msra.mxu0 %v2522_v34  ;;  %v2621_v34 = vld [vmem:[%s2791_s15 + $0x34c] ss:$16 sps:$4 sm:$0xff]  }
  0x7e   : > { %1463 = vmatpush1.bf16.msra.mxu1 %v2525_v35  ;;  %1421 = vmatprep.subr.bf16.mxu0 %v2530_v36  ;;  %v2624_v35 = vld [vmem:[%s2791_s15 + $0x44c] ss:$16 sps:$4 sm:$0xff]   ;;  %v2619_v36 = vld [vmem:[%s2791_s15 + $0x348] ss:$16 sps:$4 sm:$0xff]  }
  0x7f   : > { %1464 = vmatprep.subr.bf16.mxu1 %v2533_v37  ;;  %v2622_v37 = vld [vmem:[%s2791_s15 + $0x448] ss:$16 sps:$4 sm:$0xff]  }
  0x81   : > { %1422 = vmatpush1.bf16.msra.mxu0 %v2528_v38  ;;  %v2627_v38 = vld [vmem:[%s2791_s15 + $0x32c] ss:$16 sps:$4 sm:$0xff]  }
  0x82   : > { %1465 = vmatpush1.bf16.msra.mxu1 %v2531_v39  ;;  %1423 = vmatprep.subr.bf16.mxu0 %v2536_v40  ;;  %v2630_v39 = vld [vmem:[%s2791_s15 + $0x42c] ss:$16 sps:$4 sm:$0xff]   ;;  %v2625_v40 = vld [vmem:[%s2791_s15 + $0x328] ss:$16 sps:$4 sm:$0xff]  }
  0x83   : > { %1466 = vmatprep.subr.bf16.mxu1 %v2539_v41  ;;  %v2628_v41 = vld [vmem:[%s2791_s15 + $0x428] ss:$16 sps:$4 sm:$0xff]  }
  0x85   : > { %1424 = vmatpush1.bf16.msra.mxu0 %v2534_v42  ;;  %v2633_v42 = vld [vmem:[%s2791_s15 + $0x30c] ss:$16 sps:$4 sm:$0xff]  }
  0x86   : > { %1467 = vmatpush1.bf16.msra.mxu1 %v2537_v43  ;;  %1495 = vmatprep.subr.bf16.mxu0 %v2546_v45  ;;  %v2636_v43 = vld [vmem:[%s2791_s15 + $0x40c] ss:$16 sps:$4 sm:$0xff]   ;;  %v2634_v45 = vld [vmem:[%s2791_s15 + $0x408] ss:$16 sps:$4 sm:$0xff]  }
  0x87   : > { %1468 = vmatprep.subr.bf16.mxu1 %v2543_v44  ;;  %v2631_v44 = vld [vmem:[%s2791_s15 + $0x308] ss:$16 sps:$4 sm:$0xff]  }
  0x88   : > { %1442 = vmatmul.mubr.bf16.vlgmr.msra.gmra.mxu0 %v2909_v46 }
  0x89   : > { %1496 = vmatpush1.bf16.msra.mxu0 %v2544_v48  ;;  %1527 = vmatprep.mubr.bf16.mxu0 %v2848_v58  ;;  %v2567_v58 = vld [vmem:[%s2791_s15 + $0x16c] ss:$16 sps:$4 sm:$0xff]  }
  0x8a   : > { %1469 = vmatpush2.bf16.msra.mxu1 %v2541_v47  ;;  %1497 = vmatprep.subr.bf16.mxu0 %v2552_v50 }
  0x8b   : > { %1470 = vmatprep.subr.bf16.mxu1 %v2549_v49 }
  0x8d   : > { %1498 = vmatpush1.bf16.msra.mxu0 %v2550_v52 }
  0x8e   : > { %1471 = vmatpush2.bf16.msra.mxu1 %v2547_v51  ;;  %1499 = vmatprep.subr.bf16.mxu0 %v2558_v54 }
  0x8f   : > { %1472 = vmatprep.subr.bf16.mxu1 %v2555_v53 }
  0x91   : > { %1500 = vmatpush1.bf16.msra.mxu0 %v2556_v56 }
  0x92   : > { %1473 = vmatpush2.bf16.msra.mxu1 %v2553_v55  ;;  %1501 = vmatprep.subr.bf16.mxu0 %v2564_v59  ;;  %v323_v55 = vld [vmem:[#allocation2 + $0x30] sm:$0xff] }
  0x93   : > { %1474 = vmatprep.subr.bf16.mxu1 %v2561_v57 }
  0x95   : > { %1502 = vmatpush1.bf16.msra.mxu0 %v2562_v61  ;;  %v324_v61 = vld [vmem:[#allocation2] sm:$0xff] }
  0x96   : > { %1475 = vmatpush2.bf16.msra.mxu1 %v2559_v60  ;;  %1503 = vmatprep.subr.bf16.mxu0 %v2570_v62 }
  0x97   : > { %1476 = vmatprep.subr.bf16.mxu1 %v2567_v58 }
  0x99   : > { %1504 = vmatpush1.bf16.msra.mxu0 %v2568_v0  ;;  %v327_v0 = vld [vmem:[#allocation2 + $0x8] sm:$0xff] }
  0x9a   : > { %1477 = vmatpush2.bf16.msra.mxu1 %v2565_v63  ;;  %1505 = vmatprep.subr.bf16.mxu0 %v2576_v2 }
  0x9b   : > { %1478 = vmatprep.subr.bf16.mxu1 %v2573_v1 }
  0x9d   : > { %1506 = vmatpush1.bf16.msra.mxu0 %v2574_v4  ;;  %v328_v4 = vld [vmem:[#allocation2 + $0x20] sm:$0xff] }
  0x9e   : > { %1479 = vmatpush2.bf16.msra.mxu1 %v2571_v3  ;;  %1507 = vmatprep.subr.bf16.mxu0 %v2582_v6 }
  0x9f   : > { %1480 = vmatprep.subr.bf16.mxu1 %v2579_v5 }
  0xa1   : > { %1508 = vmatpush1.bf16.msra.mxu0 %v2580_v8 }
  0xa2   : > { %1481 = vmatpush2.bf16.msra.mxu1 %v2577_v7  ;;  %1509 = vmatprep.subr.bf16.mxu0 %v2588_v10 }
  0xa3   : > { %1482 = vmatprep.subr.bf16.mxu1 %v2585_v9 }
  0xa5   : > { %1510 = vmatpush1.bf16.msra.mxu0 %v2586_v14 }
  0xa6   : > { %1483 = vmatpush2.bf16.msra.mxu1 %v2583_v13  ;;  %1511 = vmatprep.subr.bf16.mxu0 %v2591_v15 }
  0xa7   : > { %1538 = vmatprep.subr.bf16.mxu1 %v2594_v16 }
  0xa9   : > { %1485 = vmatmul.mubr.bf16.vlgmr.msra.gmra.mxu1 %v2868_v11  ;;  %1512 = vmatpush2.bf16.msra.mxu0 %v2589_v17  ;;  %v2604_v11 = vld [vmem:[%s2791_s15 + $0x4a8] ss:$16 sps:$4 sm:$0xff]  }
  0xaa   : > { %1539 = vmatpush1.bf16.msra.mxu1 %v2592_v18  ;;  %1513 = vmatprep.subr.bf16.mxu0 %v2597_v19  ;;  %v325_v18 = vld [vmem:[#allocation2 + $0x18] sm:$0xff] }
  0xab   : > { %1540 = vmatprep.subr.bf16.mxu1 %v2600_v20  ;;  %1570 = vmatprep.mubr.bf16.mxu1 %v2710_v21  ;;  %v2615_v21 = vld [vmem:[%s2791_s15 + $0x36c] ss:$16 sps:$4 sm:$0xff]  }
  0xad   : > { %1514 = vmatpush2.bf16.msra.mxu0 %v2595_v22 }
  0xae   : > { %1541 = vmatpush1.bf16.msra.mxu1 %v2598_v23  ;;  %1515 = vmatprep.subr.bf16.mxu0 %v2603_v24  ;;  %v326_v24 = vld [vmem:[#allocation2 + $0x10] sm:$0xff] }
  0xaf   : > { %1542 = vmatprep.subr.bf16.mxu1 %v2606_v25 }
  0xb1   : > { %1516 = vmatpush2.bf16.msra.mxu0 %v2601_v26 }
  0xb2   : > { %1543 = vmatpush1.bf16.msra.mxu1 %v2604_v11  ;;  %1517 = vmatprep.subr.bf16.mxu0 %v2609_v27 }
  0xb3   : > { %1544 = vmatprep.subr.bf16.mxu1 %v2612_v28 }
  0xb5   : > { %1518 = vmatpush2.bf16.msra.mxu0 %v2607_v29  ;;  %v329_v29 = vld [vmem:[#allocation2 + $0x28] sm:$0xff] }
  0xb6   : > { %1545 = vmatpush1.bf16.msra.mxu1 %v2610_v30  ;;  %1519 = vmatprep.subr.bf16.mxu0 %v2615_v21 }
  0xb7   : > { %1546 = vmatprep.subr.bf16.mxu1 %v2618_v31 }
  0xb9   : > { %1520 = vmatpush2.bf16.msra.mxu0 %v2613_v32 }
  0xba   : > { %1547 = vmatpush1.bf16.msra.mxu1 %v2616_v33  ;;  %1521 = vmatprep.subr.bf16.mxu0 %v2621_v34  ;;  %v330_v33 = vld [vmem:[#allocation2 + $0x38] sm:$0xff] }
  0xbb   : > { %1548 = vmatprep.subr.bf16.mxu1 %v2624_v35 }
  0xbd   : > { %1522 = vmatpush2.bf16.msra.mxu0 %v2619_v36 }
  0xbe   : > { %1549 = vmatpush1.bf16.msra.mxu1 %v2622_v37  ;;  %1523 = vmatprep.subr.bf16.mxu0 %v2627_v38 }
  0xbf   : > { %1550 = vmatprep.subr.bf16.mxu1 %v2630_v39 }
  0xc1   : > { %1524 = vmatpush2.bf16.msra.mxu0 %v2625_v40 }
  0xc2   : > { %1551 = vmatpush1.bf16.msra.mxu1 %v2628_v41  ;;  %1525 = vmatprep.subr.bf16.mxu0 %v2633_v42 }
  0xc3   : > { %1552 = vmatprep.subr.bf16.mxu1 %v2636_v43 }
  0xc5   : > { %1526 = vmatpush2.bf16.msra.mxu0 %v2631_v44 }
  0xc6   : > { %1553 = vmatpush1.bf16.msra.mxu1 %v2634_v45 }
  0xc8   : > { %1528 = vmatmul.mubr.bf16.vlgmr.msra.gmra.mxu0 %v2871_v12 }
  0xc9   : > { %1571 = vmatmul.mubr.bf16.vlgmr.msra.gmra.mxu1 %v2909_v46 }
 0x128   : > { %v1357_v47 = vpop.f32.mrf.mxu0 }
 0x129   : > { %v1400_v48 = vpop.f32.mrf.mxu1 }
 0x12a   : > { %v1359_v49 = vpop.f32.mrf.mxu0  ;;  %v1401_v54 = vadd.f32 %v1400_v48, %v1357_v47 }
 0x12b   : > { %v1402_v50 = vpop.f32.mrf.mxu1 }
 0x12c   : > { %v1361_v51 = vpop.f32.mrf.mxu0  ;;  %v1403_v57 = vadd.f32 %v1402_v50, %v1359_v49 }
 0x12d   : > { %v1404_v52 = vpop.f32.mrf.mxu1 }
 0x12e   : > { %v1363_v53 = vpop.f32.mrf.mxu0  ;;  %v1405_v62 = vadd.f32 %v1404_v52, %v1361_v51 }
 0x12f   : > { %v1406_v60 = vpop.f32.mrf.mxu1 }
 0x130   : > { %v1407_v1 = vadd.f32 %v1406_v60, %v1363_v53 }
 0x148   : > { %v1443_v56 = vpop.f32.mrf.mxu0 }
 0x149   : > { %v1444_v59 = vadd.f32 %v1443_v56, %v1401_v54 }
 0x14a   : > { %v1445_v58 = vpop.f32.mrf.mxu0 }
 0x14b   : > { %v1581_v63 = vadd.f32 %v1444_v59, %v323_v55  ;;  %v1446_v12 = vadd.f32 %v1445_v58, %v1403_v57 }
 0x14c   : > { %v1447_v46 = vpop.f32.mrf.mxu0 }
 0x14d   : > { %1589 = vst [vmem:[#allocation2 + $0x30] sm:$0xff] %v1581_v63  ;;  %v1582_v2 = vadd.f32 %v1446_v12, %v324_v61  ;;  %v1448_v3 = vadd.f32 %v1447_v46, %v1405_v62 }
 0x14e   : > { %v1449_v5 = vpop.f32.mrf.mxu0 }
 0x14f   : > { %1590 = vst [vmem:[#allocation2] sm:$0xff] %v1582_v2  ;;  %v1585_v6 = vadd.f32 %v1448_v3, %v327_v0  ;;  %v1450_v7 = vadd.f32 %v1449_v5, %v1407_v1 }
 0x151   : > { %1593 = vst [vmem:[#allocation2 + $0x8] sm:$0xff] %v1585_v6  ;;  %v1586_v8 = vadd.f32 %v1450_v7, %v328_v4 }
 0x153   : > { %1594 = vst [vmem:[#allocation2 + $0x20] sm:$0xff] %v1586_v8 }
 0x169   : > { %v1486_v9 = vpop.f32.mrf.mxu1 }
 0x16b   : > { %v1488_v10 = vpop.f32.mrf.mxu1 }
 0x16d   : > { %v1490_v13 = vpop.f32.mrf.mxu1 }
 0x16f   : > { %v1492_v14 = vpop.f32.mrf.mxu1 }
 0x188   : > { %v1529_v15 = vpop.f32.mrf.mxu0 }
 0x189   : > { %v1572_v16 = vpop.f32.mrf.mxu1  ;;  %v1530_v17 = vadd.f32 %v1529_v15, %v1486_v9 }
 0x18a   : > { %v1531_v19 = vpop.f32.mrf.mxu0 }
 0x18b   : > { %v1574_v20 = vpop.f32.mrf.mxu1  ;;  %v1573_v22 = vadd.f32 %v1572_v16, %v1530_v17  ;;  %v1532_v23 = vadd.f32 %v1531_v19, %v1488_v10 }
 0x18c   : > { %v1533_v25 = vpop.f32.mrf.mxu0 }
 0x18d   : > { %v1576_v26 = vpop.f32.mrf.mxu1  ;;  %v1583_v11 = vadd.f32 %v1573_v22, %v325_v18  ;;  %v1575_v27 = vadd.f32 %v1574_v20, %v1532_v23  ;;  %v1534_v28 = vadd.f32 %v1533_v25, %v1490_v13 }
 0x18e   : > { %v1535_v30 = vpop.f32.mrf.mxu0 }
 0x18f   : > { %1591 = vst [vmem:[#allocation2 + $0x18] sm:$0xff] %v1583_v11  ;;  %v1584_v21 = vadd.f32 %v1575_v27, %v326_v24  ;;  %v1577_v31 = vadd.f32 %v1576_v26, %v1534_v28  ;;  %v1536_v32 = vadd.f32 %v1535_v30, %v1492_v14  ;;  %v1578_v34 = vpop.f32.mrf.mxu1 }
 0x191   : > { %1592 = vst [vmem:[#allocation2 + $0x10] sm:$0xff] %v1584_v21  ;;  %v1587_v35 = vadd.f32 %v1577_v31, %v329_v29  ;;  %v1579_v36 = vadd.f32 %v1578_v34, %v1536_v32  ;;  %1600 = sbr.rel (%p2262_p11) target bundleno = 646 (0x286), region = 74 }
 0x193   : > { %1595 = vst [vmem:[#allocation2 + $0x28] sm:$0xff] %v1587_v35  ;;  %v1588_v37 = vadd.f32 %v1579_v36, %v330_v33 }
 0x195   : > { %1596 = vst [vmem:[#allocation2 + $0x38] sm:$0xff] %v1588_v37 }
 0x196   : > { %v2637_v38 = vld [vmem:[%s3106_s3 + $0x78] sm:$0xff]   ;;  %v2641_v42 = vld [vmem:[%s3106_s3 + $0x70] sm:$0xff]   ;;  %v2645_v47 = vld [vmem:[%s3106_s3 + $0x68] sm:$0xff]   ;;  %v1611_v59 = vlaneseq }
 0x197   : > { %v2638_v39 = vld [vmem:[%s3106_s3 + $0xf8] sm:$0xff]   ;;  %2302 = vmatprep.subr.bf16.mxu0 %v2637_v38  ;;  %v2642_v43 = vld [vmem:[%s3106_s3 + $0xf0] sm:$0xff]   ;;  %v2646_v48 = vld [vmem:[%s3106_s3 + $0xe8] sm:$0xff]  }
 0x198   : > { %v2639_v40 = vld [vmem:[%s3106_s3 + $0x38] sm:$0xff]   ;;  %2324 = vmatprep.subr.bf16.mxu1 %v2638_v39  ;;  %v2643_v44 = vld [vmem:[%s3106_s3 + $0x30] sm:$0xff]   ;;  %v2647_v49 = vld [vmem:[%s3106_s3 + $0x28] sm:$0xff]   ;;  %v1612_v63 = vshrl.u32 %v1611_v59, 7 }
 0x199   : > { %v2640_v41 = vld [vmem:[%s3106_s3 + $0xb8] sm:$0xff]   ;;  %2303 = vmatpush3.bf16.msra.mxu0 %v2639_v40  ;;  %v2644_v45 = vld [vmem:[%s3106_s3 + $0xb0] sm:$0xff]   ;;  %v2648_v50 = vld [vmem:[%s3106_s3 + $0xa8] sm:$0xff]  }
 0x19a   : > { %2325 = vmatpush3.bf16.msra.mxu1 %v2640_v41  ;;  %2304 = vmatprep.subr.bf16.mxu0 %v2641_v42  ;;  %v2649_v51 = vld [vmem:[%s3106_s3 + $0x60] sm:$0xff]   ;;  %v2653_v55 = vld [vmem:[%s3106_s3 + $0x58] sm:$0xff]   ;;  %v2657_v61 = vld [vmem:[%s3106_s3 + $0x50] sm:$0xff]   ;;  %v1617_v2 = vsub.s32 1, %v1612_v63  ;;  %v1625_v4 = vsub.s32 3, %v1612_v63  ;;  %v1613_v6 = vsub.s32 0, %v1612_v63 }
 0x19b   : > { %2326 = vmatprep.subr.bf16.mxu1 %v2642_v43  ;;  %v2650_v52 = vld [vmem:[%s3106_s3 + $0xe0] sm:$0xff]   ;;  %v2654_v56 = vld [vmem:[%s3106_s3 + $0xd8] sm:$0xff]   ;;  %v2658_v58 = vld [vmem:[%s3106_s3 + $0xd0] sm:$0xff]   ;;  %v1621_v8 = vsub.s32 2, %v1612_v63 }
 0x19c   : > { %v2651_v53 = vld [vmem:[%s3106_s3 + $0x20] sm:$0xff]   ;;  %v2655_v57 = vld [vmem:[%s3106_s3 + $0x18] sm:$0xff]   ;;  %v2659_v62 = vld [vmem:[%s3106_s3 + $0x10] sm:$0xff]  }
 0x19d   : > { %2305 = vmatpush3.bf16.msra.mxu0 %v2643_v44  ;;  %v2652_v54 = vld [vmem:[%s3106_s3 + $0xa0] sm:$0xff]   ;;  %v2656_v60 = vld [vmem:[%s3106_s3 + $0x98] sm:$0xff]   ;;  %v2660_v12 = vld [vmem:[%s3106_s3 + $0x90] sm:$0xff]  }
 0x19e   : > { %2327 = vmatpush3.bf16.msra.mxu1 %v2644_v45  ;;  %2306 = vmatprep.subr.bf16.mxu0 %v2645_v47  ;;  %v2661_v0 = vld [vmem:[%s3106_s3 + $0x48] sm:$0xff]   ;;  %v2665_v5 = vld [vmem:[%s3106_s3 + $0x40] sm:$0xff]   ;;  %v1604_v17 = vld [vmem:[#allocation2 + $0x10] sm:$0xff] }
 0x19f   : > { %2328 = vmatprep.subr.bf16.mxu1 %v2646_v48  ;;  %v2662_v46 = vld [vmem:[%s3106_s3 + $0xc8] sm:$0xff]   ;;  %v2666_v7 = vld [vmem:[%s3106_s3 + $0xc0] sm:$0xff]   ;;  %v1608_v18 = vld [vmem:[#allocation2 + $0x38] sm:$0xff] }
 0x1a0   : > { %v2663_v1 = vld [vmem:[%s3106_s3 + $0x8] sm:$0xff]   ;;  %v2667_v9 = vld [vmem:[%s3106_s3] sm:$0xff]   ;;  %v1601_v20 = vld [vmem:[#allocation2 + $0x30] sm:$0xff] }
 0x1a1   : > { %2307 = vmatpush3.bf16.msra.mxu0 %v2647_v49  ;;  %v2664_v3 = vld [vmem:[%s3106_s3 + $0x88] sm:$0xff]   ;;  %v2668_v10 = vld [vmem:[%s3106_s3 + $0x80] sm:$0xff]   ;;  %v1603_v25 = vld [vmem:[#allocation2 + $0x18] sm:$0xff] }
 0x1a2   : > { %2329 = vmatpush3.bf16.msra.mxu1 %v2648_v50  ;;  %2308 = vmatprep.subr.bf16.mxu0 %v2649_v51  ;;  %v1602_v13 = vld [vmem:[#allocation2] sm:$0xff]  ;;  %v1605_v24 = vld [vmem:[#allocation2 + $0x8] sm:$0xff] }
 0x1a3   : > { %2330 = vmatprep.subr.bf16.mxu1 %v2650_v52  ;;  %v1606_v14 = vld [vmem:[#allocation2 + $0x20] sm:$0xff]  ;;  %v1607_v26 = vld [vmem:[#allocation2 + $0x28] sm:$0xff] }
 0x1a4   : > { %v1609_v15 = vld [vmem:[%s3105_s2] sm:$0xf] }
 0x1a5   : > { %2309 = vmatpush3.bf16.msra.mxu0 %v2651_v53  ;;  %v1618_v16 = vrot.slane %v1609_v15, %v1617_v2  ;;  %v1626_v19 = vrot.slane %v1609_v15, %v1625_v4  ;;  %v1614_v22 = vrot.slane %v1609_v15, %v1613_v6  ;;  %v1622_v23 = vrot.slane %v1609_v15, %v1621_v8  ;;  %v2263_v48 = vld [vmem:[%s3107_s4] ss:$0 sm:$0xff] }
 0x1a6   : > { %2331 = vmatpush3.bf16.msra.mxu1 %v2652_v54  ;;  %2310 = vmatprep.subr.bf16.mxu0 %v2653_v55 }
 0x1a7   : > { %2332 = vmatprep.subr.bf16.mxu1 %v2654_v56  ;;  %v1632_v11 = vadd.f32 %v1618_v16, %v1602_v13  ;;  %v1636_v27 = vadd.f32 %v1618_v16, %v1606_v14  ;;  %v1634_v28 = vadd.f32 %v1626_v19, %v1604_v17  ;;  %v1638_v29 = vadd.f32 %v1626_v19, %v1608_v18 }
 0x1a8   : > { %v1631_v30 = vadd.f32 %v1614_v22, %v1601_v20  ;;  %v1635_v21 = vadd.f32 %v1614_v22, %v1605_v24  ;;  %v1633_v31 = vadd.f32 %v1622_v23, %v1603_v25  ;;  %v1637_v32 = vadd.f32 %v1622_v23, %v1607_v26 }
 0x1a9   : > { %2311 = vmatpush3.bf16.msra.mxu0 %v2655_v57  ;;  %v1640_v33 = vmax.f32 %v1632_v11, 0.0  ;;  %v1644_v34 = vmax.f32 %v1636_v27, 0.0  ;;  %v1642_v35 = vmax.f32 %v1634_v28, 0.0  ;;  %v1646_v36 = vmax.f32 %v1638_v29, 0.0 }
 0x1aa   : > { %2333 = vmatpush3.bf16.msra.mxu1 %v2656_v60  ;;  %2312 = vmatprep.subr.bf16.mxu0 %v2657_v61  ;;  %v1639_v37 = vmax.f32 %v1631_v30, 0.0  ;;  %v1643_v38 = vmax.f32 %v1635_v21, 0.0  ;;  %v1641_v39 = vmax.f32 %v1633_v31, 0.0  ;;  %v1645_v40 = vmax.f32 %v1637_v32, 0.0 }
 0x1ab   : > { %2334 = vmatprep.subr.bf16.mxu1 %v2658_v58  ;;  %v1648_v41 = vpack.c.bf16 %v1644_v34, %v1640_v33  ;;  %v1650_v42 = vpack.c.bf16 %v1646_v36, %v1642_v35 }
 0x1ac   : > { %v1647_v43 = vpack.c.bf16 %v1643_v38, %v1639_v37  ;;  %v1649_v44 = vpack.c.bf16 %v1645_v40, %v1641_v39 }
 0x1ad   : > { %2313 = vmatpush3.bf16.msra.mxu0 %v2659_v62  ;;  %1946 = vmatprep.mubr.bf16.mxu0 %v1648_v41 }
 0x1ae   : > { %2335 = vmatpush3.bf16.msra.mxu1 %v2660_v12  ;;  %2314 = vmatprep.subr.bf16.mxu0 %v2661_v0 }
 0x1af   : > { %2336 = vmatprep.subr.bf16.mxu1 %v2662_v46  ;;  %1987 = vmatprep.mubr.bf16.mxu1 %v1650_v42 }
 0x1b1   : > { %2315 = vmatpush3.bf16.msra.mxu0 %v2663_v1 }
 0x1b2   : > { %2337 = vmatpush3.bf16.msra.mxu1 %v2664_v3  ;;  %2316 = vmatprep.subr.bf16.mxu0 %v2665_v5 }
 0x1b3   : > { %2338 = vmatprep.subr.bf16.mxu1 %v2666_v7 }
 0x1b5   : > { %2317 = vmatpush3.bf16.msra.mxu0 %v2667_v9 }
 0x1b6   : > { %2339 = vmatpush3.bf16.msra.mxu1 %v2668_v10 }
 0x1b8   : > { %1947 = vmatmul.mubr.bf16.vlgmr.msra.gmra.mxu0 %v1647_v43 }
 0x1b9   : > { %1988 = vmatmul.mubr.bf16.vlgmr.msra.gmra.mxu1 %v1649_v44 }
 0x278   : > { %v2318_v45 = vpop.f32.mrf.mxu0 }
 0x279   : > { %v2340_v47 = vpop.f32.mrf.mxu1 }
 0x27a   : > { %v2319_v49 = vpop.f32.mrf.mxu0 }
 0x27b   : > { %v2341_v50 = vpop.f32.mrf.mxu1  ;;  %v2320_v51 = vadd.f32 %v2319_v49, %v2318_v45 }
 0x27c   : > { %v2321_v52 = vpop.f32.mrf.mxu0  ;;  %v2342_v55 = vadd.f32 %v2341_v50, %v2340_v47 }
 0x27d   : > { %v2343_v53 = vpop.f32.mrf.mxu1  ;;  %v1949_v54 = vadd.f32 %v2320_v51, %v2263_v48 }
 0x27e   : > { %v2322_v56 = vpop.f32.mrf.mxu0 }
 0x27f   : > { %v2344_v57 = vpop.f32.mrf.mxu1  ;;  %v1990_v59 = vadd.f32 %v2342_v55, %v1949_v54  ;;  %v2323_v60 = vadd.f32 %v2322_v56, %v2321_v52 }
 0x280   : > { %v2345_v58 = vadd.f32 %v2344_v57, %v2343_v53 }
 0x281   : > { %1996 = vst [vmem:[%s3108_s5] sm:$0xff] %v1990_v59  ;;  %v1952_v61 = vadd.f32 %v2323_v60, %v2263_v48 }
 0x283   : > { %v1993_v62 = vadd.f32 %v2345_v58, %v1952_v61 }
 0x285   : > { %1997 = vst [vmem:[%s3108_s5 + $0x8] sm:$0xff] %v1993_v62 }
 0x286 PF: > { %s15_s22 = sadd.s32 1, %s2707_s22   ;;  %s3109_s18 = smov %s2695_s19 }
 0x287   : > { %p12_p12 = scmp.ge.s32.totalorder %s15_s22, 7   ;;  %s3110_s19 = smov %s2776_s26 }
 0x288   : > { %s3111_s20 = smov %s2703_s21  ;;  %s3112_s21 = smov %s3114_s23 }
 0x289   :  { %14 = sbr.rel (!%p12_p12) target bundleno = 3 (0x3), region = 118 }

</bundles_post_ra>
